<compile_context>
chip_gen: v6e
topology: v6e:2x2x1
jax: 0.10.0
libtpu: 0.0.40
codegen_flags: <defaults>
</compile_context>

<pallas_src>
import math

import jax
import jax.numpy as jnp
from jax.experimental import pallas as pl
from jax.experimental.pallas import tpu as pltpu

_QN = -128.0
_QP = 127.0
_LANES = 128


def _fake_quant(v, scale):
    # symmetric int8 fake quantization (forward pass of an LSQ-style quantizer)
    return jnp.round(jnp.clip(v / scale, _QN, _QP)) * scale


def _silu(v):
    return v / (1.0 + jnp.exp(-v))


def _round_up(x, m):
    return ((x + m - 1) // m) * m


def _make_mlp_kernel(num_layers, matmul_dtype, precision):
    """Kernel body: fused activation fake-quant + chain of (pre-scaled) matmuls."""

    def kernel(s_a_ref, t_ref, x_ref, *refs):
        w_refs = refs[:num_layers]
        o_ref = refs[num_layers]

        s_a = s_a_ref[0]   # activation quant scale (scalar, SMEM)
        t = t_ref[0]       # the ones(1) registered buffer

        # quan_a_fn(x) * t : exact divide so round() boundary decisions are
        # identical to the reference / torch module (no recip-mul rewrite).
        q = jnp.round(jnp.clip(x_ref[...] / s_a, _QN, _QP))
        h = (q * s_a) * t

        for l in range(num_layers):
            # Weights arrive pre-scaled (layer 0 also pre-fake-quantized) and
            # zero-padded to 128 lanes, so the loop is pure MXU dots + SiLU.
            h = jnp.dot(
                h.astype(matmul_dtype),
                w_refs[l][...],
                preferred_element_type=jnp.float32,
                precision=precision,
            )
            if l < num_layers - 1:
                # Exact SiLU in f32 (same expression as the reference).
                # Padded lanes stay exactly zero because silu(0) == 0.
                h = h / (1.0 + jnp.exp(-h))

        o_ref[...] = h.astype(o_ref.dtype)

    return kernel


def _pick_tm(N):
    """Rows per grid step.

    After lane-padding, 256-512 rows keeps the fused quant->matmul->SiLU chain
    close to the vreg file (v5e's single vst slot prefers the smaller end;
    v6e/v7x tolerate 512).  For small N (the shipped 64 nodes) a single block
    is strictly better: the kernel is launch/prologue-overhead bound.
    """
    for tm in (512, 256):
        if N >= 2 * tm and N % tm == 0:
            return tm
    if N >= 512 and N % 2 == 0 and (N // 2) % 8 == 0:
        return N // 2
    return N


def quant_scalar_mlp(x, weights, s_a, s_w, t, nonlin_const, *, tm=None,
                     matmul_dtype=jnp.float32, core_parallel=False):
    """Pallas wrapper. x: (N, in_dim) f32; weights: list of (h_in, h_out) f32.

    matmul_dtype=jnp.bfloat16 is recommended on v6e/v7x when ~1e-3 accuracy is
    acceptable; the default f32 path matches the torch module's f32 matmuls.
    core_parallel=True splits the row grid across v7x's two TensorCores (only
    useful when the grid has >= 2 steps).
    """
    N, in_dim = x.shape
    num_layers = len(weights)
    out_dim = weights[-1].shape[1]
    padded_out = _round_up(out_dim, _LANES)

    # ---- one-shot weight preparation (hoisted out of the per-tile kernel) ----
    # The fx graph scales each weight by norm_from_last / sqrt(h_in) and applies
    # quan_w_fn only to the first (scaled) matmul weight.  These depend only on
    # the parameters, not the activation batch, so do them exactly once here,
    # then zero-pad hidden/output dims to 128-lane multiples (exact: padded
    # columns stay zero through silu and contribute zero to later dots).
    prepped = []
    norm_from_last = 1.0
    for l, w in enumerate(weights):
        h_in, h_out = w.shape
        ws = w * (norm_from_last / math.sqrt(float(h_in)))
        if l == 0:
            ws = _fake_quant(ws, s_w[0])        # exact divide, matches reference
        rows = h_in if l == 0 else _round_up(h_in, _LANES)   # x itself stays unpadded
        cols = _round_up(h_out, _LANES)
        wp = jnp.zeros((rows, cols), dtype=jnp.float32).at[:h_in, :h_out].set(ws)
        prepped.append(wp.astype(matmul_dtype))
        if l < num_layers - 1:
            norm_from_last = nonlin_const

    # f32 path uses HIGHEST so MXU passes reproduce true f32 matmul numerics.
    precision = (jax.lax.Precision.HIGHEST if matmul_dtype == jnp.float32
                 else jax.lax.Precision.DEFAULT)

    if tm is None:
        tm = _pick_tm(N)
    assert N % tm == 0 and (tm == N or tm % 8 == 0), (N, tm)

    kernel = _make_mlp_kernel(num_layers, matmul_dtype, precision)

    smem_spec = pl.BlockSpec(memory_space=pltpu.MemorySpace.SMEM)
    in_specs = [
        smem_spec,                                      # s_a
        smem_spec,                                      # t
        pl.BlockSpec((tm, in_dim), lambda i: (i, 0)),   # x tile (rows blocked)
    ]
    for w in prepped:
        # Resident weights: constant index_map -> fetched once, kept in VMEM.
        in_specs.append(pl.BlockSpec(w.shape, lambda i: (0, 0)))

    # Lane-dense output (padded_out is a multiple of 128 -> unmasked vst);
    # the wrapper slices back to the true output width.
    out_specs = pl.BlockSpec((tm, padded_out), lambda i: (i, 0))

    flops = 2 * N * sum(int(w.shape[0]) * int(w.shape[1]) for w in prepped)
    transcendentals = N * sum(int(w.shape[1]) for w in prepped[:-1])  # exp per SiLU elem
    bytes_accessed = (int(x.size) * x.dtype.itemsize
                      + sum(int(w.size) * w.dtype.itemsize for w in prepped)
                      + N * padded_out * 4)

    dim_sem = (pltpu.CORE_PARALLEL if core_parallel else "parallel",)

    out = pl.pallas_call(
        kernel,
        grid=(N // tm,),
        in_specs=in_specs,
        out_specs=out_specs,
        out_shape=jax.ShapeDtypeStruct((N, padded_out), jnp.float32),
        compiler_params=pltpu.CompilerParams(dimension_semantics=dim_sem),
        cost_estimate=pl.CostEstimate(flops=flops,
                                      transcendentals=transcendentals,
                                      bytes_accessed=bytes_accessed),
    )(s_a, t, x, *prepped)

    return out[:, :out_dim]


def _reference(x, weights, s_a, s_w, t, nonlin_const):
    """Pure-JAX reference of the same forward pass (mirrors the fx graph)."""
    num_layers = len(weights)
    h = _fake_quant(x, s_a[0]) * t[0]
    norm_from_last = 1.0
    for l, w in enumerate(weights):
        h_in = w.shape[0]
        ws = w * (norm_from_last / math.sqrt(float(h_in)))
        if l == 0:
            ws = _fake_quant(ws, s_w[0])
        h = jnp.dot(h, ws, precision=jax.lax.Precision.HIGHEST)
        if l < num_layers - 1:
            h = _silu(h)
            norm_from_last = nonlin_const
    return h


if __name__ == "__main__":
    # small shapes implied by the module: node features (N, in_dim) of scalar irreps
    N = 64                       # number of nodes
    in_dim = 32                  # mul of the 0e irrep in irreps_in[field]
    latent_dims = [64, 64]       # mlp_latent_dimensions
    out_dim = 32                 # mlp_output_dimension

    key = jax.random.PRNGKey(0)
    k_x, k_c, *k_ws = jax.random.split(key, 3 + len(latent_dims) + 1)

    # normalize2mom(silu) constant, computed deterministically (matches e3nn's
    # Monte-Carlo second-moment normalization to ~3 decimals).
    z = jax.random.normal(k_c, (1_000_000,), dtype=jnp.float32)
    nonlin_const = float(1.0 / jnp.sqrt(jnp.mean(_silu(z) ** 2)))

    # mlp_initialization='uniform' in ScalarMLPFunction: U(-sqrt(3), sqrt(3))
    dims = [in_dim] + latent_dims + [out_dim]
    weights = []
    for l, (h_in, h_out) in enumerate(zip(dims, dims[1:])):
        weights.append(
            jax.random.uniform(
                k_ws[l], (h_in, h_out), dtype=jnp.float32,
                minval=-math.sqrt(3.0), maxval=math.sqrt(3.0),
            )
        )

    x = jax.random.normal(k_x, (N, in_dim), dtype=jnp.float32)

    # deterministic LSQ-style scale init for the synthetic quantizers
    s_a = (2.0 * jnp.mean(jnp.abs(x)) / math.sqrt(_QP)).reshape(1).astype(jnp.float32)
    w0_scaled = weights[0] * (1.0 / math.sqrt(float(in_dim)))
    s_w = (2.0 * jnp.mean(jnp.abs(w0_scaled)) / math.sqrt(_QP)).reshape(1).astype(jnp.float32)
    t = jnp.ones((1,), dtype=jnp.float32)  # registered buffer 't'

    out = quant_scalar_mlp(x, weights, s_a, s_w, t, nonlin_const)
    out = jax.block_until_ready(out)

    ref = jax.block_until_ready(_reference(x, weights, s_a, s_w, t, nonlin_const))
    assert out.shape == (N, out_dim)
    # The f32 path (exact divide fake-quant, exact SiLU, HIGHEST-precision dots)
    # matches the reference to ulp level; tolerance kept at 2e-3 for headroom.
    assert jnp.allclose(out, ref, atol=2e-3, rtol=2e-3), "mismatch vs reference"

    print("KERNEL_OK")
</pallas_src>

<mosaic_0001>
module attributes {stable_mosaic.version = 11 : i64} {
  func.func @kernel(%arg0: i32, %arg1: memref<1xf32, #tpu.memory_space<smem>>, %arg2: memref<1xf32, #tpu.memory_space<smem>>, %arg3: memref<64x32xf32, #tpu.memory_space<vmem>>, %arg4: memref<32x128xf32, #tpu.memory_space<vmem>>, %arg5: memref<128x128xf32, #tpu.memory_space<vmem>>, %arg6: memref<128x128xf32, #tpu.memory_space<vmem>>, %arg7: memref<64x128xf32, #tpu.memory_space<vmem>>) attributes {dimension_semantics = [#tpu.dimension_semantics<parallel>], iteration_bounds = array<i64: 1>, scalar_prefetch = 0 : i64, scratch_operands = 0 : i64, tpu.core_type = #tpu.core_type<tc>, window_params = [{transform_indices = @transform_0, window_bounds = array<i64: 1>}, {transform_indices = @transform_1, window_bounds = array<i64: 1>}, {transform_indices = @transform_2, window_bounds = array<i64: 64, 32>}, {pipeline_mode = #tpu.pipeline_mode<synchronous>, transform_indices = @transform_3, window_bounds = array<i64: 32, 128>}, {pipeline_mode = #tpu.pipeline_mode<synchronous>, transform_indices = @transform_4, window_bounds = array<i64: 128, 128>}, {pipeline_mode = #tpu.pipeline_mode<synchronous>, transform_indices = @transform_5, window_bounds = array<i64: 128, 128>}, {transform_indices = @transform_6, window_bounds = array<i64: 64, 128>}]} {
    %c0 = arith.constant 0 : index
    %0 = memref.load %arg1[%c0] : memref<1xf32, #tpu.memory_space<smem>>
    %c0_0 = arith.constant 0 : index
    %1 = memref.load %arg2[%c0_0] : memref<1xf32, #tpu.memory_space<smem>>
    %c0_1 = arith.constant 0 : index
    %c0_2 = arith.constant 0 : index
    %2 = vector.load %arg3[%c0_1, %c0_2] : memref<64x32xf32, #tpu.memory_space<vmem>>, vector<64x32xf32>
    %3 = vector.broadcast %0 : f32 to vector<64x32xf32>
    %4 = arith.divf %2, %3 : vector<64x32xf32>
    %cst = arith.constant -1.280000e+02 : f32
    %cst_3 = arith.constant 1.270000e+02 : f32
    %5 = vector.broadcast %cst : f32 to vector<64x32xf32>
    %6 = arith.maximumf %5, %4 : vector<64x32xf32>
    %7 = vector.broadcast %cst_3 : f32 to vector<64x32xf32>
    %8 = arith.minimumf %7, %6 : vector<64x32xf32>
    %9 = math.roundeven %8 : vector<64x32xf32>
    %10 = vector.broadcast %0 : f32 to vector<64x32xf32>
    %11 = arith.mulf %9, %10 : vector<64x32xf32>
    %12 = vector.broadcast %1 : f32 to vector<64x32xf32>
    %13 = arith.mulf %11, %12 : vector<64x32xf32>
    %c0_4 = arith.constant 0 : index
    %c0_5 = arith.constant 0 : index
    %14 = vector.load %arg4[%c0_4, %c0_5] : memref<32x128xf32, #tpu.memory_space<vmem>>, vector<32x128xf32>
    %cst_6 = arith.constant dense<0.000000e+00> : vector<64x128xf32>
    %15 = tpu.matmul %13, %14, %cst_6 {dimension_numbers = #tpu.dot_dimension_numbers<[1], [0], [0], [1], [0, 0, 1, 1], [], []>, precision = #tpu.contract_precision<fp32>} : vector<64x32xf32>, vector<32x128xf32>, vector<64x128xf32> -> vector<64x128xf32>
    %cst_7 = arith.constant 0.000000e+00 : f32
    %16 = vector.broadcast %cst_7 : f32 to vector<64x128xf32>
    %17 = arith.subf %16, %15 : vector<64x128xf32>
    %18 = math.exp %17 : vector<64x128xf32>
    %cst_8 = arith.constant 1.000000e+00 : f32
    %19 = vector.broadcast %cst_8 : f32 to vector<64x128xf32>
    %20 = arith.addf %19, %18 : vector<64x128xf32>
    %21 = arith.divf %15, %20 : vector<64x128xf32>
    %c0_9 = arith.constant 0 : index
    %c0_10 = arith.constant 0 : index
    %22 = vector.load %arg5[%c0_9, %c0_10] : memref<128x128xf32, #tpu.memory_space<vmem>>, vector<128x128xf32>
    %cst_11 = arith.constant dense<0.000000e+00> : vector<64x128xf32>
    %23 = tpu.matmul %21, %22, %cst_11 {dimension_numbers = #tpu.dot_dimension_numbers<[1], [0], [0], [1], [0, 0, 1, 1], [], []>, precision = #tpu.contract_precision<fp32>} : vector<64x128xf32>, vector<128x128xf32>, vector<64x128xf32> -> vector<64x128xf32>
    %cst_12 = arith.constant 0.000000e+00 : f32
    %24 = vector.broadcast %cst_12 : f32 to vector<64x128xf32>
    %25 = arith.subf %24, %23 : vector<64x128xf32>
    %26 = math.exp %25 : vector<64x128xf32>
    %cst_13 = arith.constant 1.000000e+00 : f32
    %27 = vector.broadcast %cst_13 : f32 to vector<64x128xf32>
    %28 = arith.addf %27, %26 : vector<64x128xf32>
    %29 = arith.divf %23, %28 : vector<64x128xf32>
    %c0_14 = arith.constant 0 : index
    %c0_15 = arith.constant 0 : index
    %30 = vector.load %arg6[%c0_14, %c0_15] : memref<128x128xf32, #tpu.memory_space<vmem>>, vector<128x128xf32>
    %cst_16 = arith.constant dense<0.000000e+00> : vector<64x128xf32>
    %31 = tpu.matmul %29, %30, %cst_16 {dimension_numbers = #tpu.dot_dimension_numbers<[1], [0], [0], [1], [0, 0, 1, 1], [], []>, precision = #tpu.contract_precision<fp32>} : vector<64x128xf32>, vector<128x128xf32>, vector<64x128xf32> -> vector<64x128xf32>
    %c0_17 = arith.constant 0 : index
    %c0_18 = arith.constant 0 : index
    %32 = vector.load %arg7[%c0_17, %c0_18] : memref<64x128xf32, #tpu.memory_space<vmem>>, vector<64x128xf32>
    tpu.vector_store %arg7[%c0_17, %c0_18], %31 {strides = array<i32>} : memref<64x128xf32, #tpu.memory_space<vmem>>, vector<64x128xf32>,
    return
  }
  func.func @transform_0(%arg0: i32) -> i32 {
    %c0_i32 = arith.constant 0 : i32
    %c0_i32_0 = arith.constant 0 : i32
    return %c0_i32 : i32
  }
  func.func @transform_1(%arg0: i32) -> i32 {
    %c0_i32 = arith.constant 0 : i32
    %c0_i32_0 = arith.constant 0 : i32
    return %c0_i32 : i32
  }
  func.func @transform_2(%arg0: i32) -> (i32, i32) {
    %c0_i32 = arith.constant 0 : i32
    %c0_i32_0 = arith.constant 0 : i32
    return %arg0, %c0_i32 : i32, i32
  }
  func.func @transform_3(%arg0: i32) -> (i32, i32) {
    %c0_i32 = arith.constant 0 : i32
    %c0_i32_0 = arith.constant 0 : i32
    %c0_i32_1 = arith.constant 0 : i32
    return %c0_i32, %c0_i32_0 : i32, i32
  }
  func.func @transform_4(%arg0: i32) -> (i32, i32) {
    %c0_i32 = arith.constant 0 : i32
    %c0_i32_0 = arith.constant 0 : i32
    %c0_i32_1 = arith.constant 0 : i32
    return %c0_i32, %c0_i32_0 : i32, i32
  }
  func.func @transform_5(%arg0: i32) -> (i32, i32) {
    %c0_i32 = arith.constant 0 : i32
    %c0_i32_0 = arith.constant 0 : i32
    %c0_i32_1 = arith.constant 0 : i32
    return %c0_i32, %c0_i32_0 : i32, i32
  }
  func.func @transform_6(%arg0: i32) -> (i32, i32) {
    %c0_i32 = arith.constant 0 : i32
    %c0_i32_0 = arith.constant 0 : i32
    return %arg0, %c0_i32 : i32, i32
  }
}

</mosaic_0001>

<bundles_post_ra>
// kernel: tpu_custom_call.1
= control target key start
LH: loop header
LB: loop body
LE: loop exit
PB: predicated region body
PF: predicated region fallthrough
CT: control target
= control target key end

     0   :  { %13 = vsyncpa [#allocation5], 0  ;;  %s5488_s0 = inlined_call_operand.<no memory space> [shape: f32[1], index: 0, kind: input, shape index: {}]   ;;  %s5489_s1 = inlined_call_operand.<no memory space> [shape: f32[1], index: 1, kind: input, shape index: {}]   ;;  %s5490_s2 = inlined_call_operand.vmem [shape: f32[64,32], index: 2, kind: input, shape index: {}]   ;;  %s5491_s3 = inlined_call_operand.vmem [shape: f32[32,128], index: 3, kind: input, shape index: {}]   ;;  %s5492_s4 = inlined_call_operand.hbm [shape: f32[128,128], index: 4, kind: input, shape index: {}]   ;;  %s5493_s5 = inlined_call_operand.hbm [shape: f32[128,128], index: 5, kind: input, shape index: {}]   ;;  %s5494_s6 = inlined_call_operand.hbm [shape: f32[64,128], index: 6, kind: output, shape index: {}]  }
   0x1   :  { %14 = vsyncpa [#allocation8], 0 }
   0x2   :  { %15 = vsyncpa [#allocation6], 0  ;;  %s4177_s21 = smov [#allocation4]  }
   0x3   :  { %s29_s22 = sshll.u32 %s4177_s21, 4  ;;  %s30_s22 = int_to_ptr.vmem [resolvable:$true] %s29_s22 }
   0x4   :  { %s4119_s23 = scalar_lea.vmem %s30_s22, 2048  ;;  %p4124_p1 = scmp.lt.s32.totalorder %s30_s22, %s30_s22 }
   0x5   :  { %p4120_p0 = scmp.ne.s32.totalorder %s30_s22, %s4119_s23  ;;  %p4125_p2 = scmp.lt.s32.totalorder %s4119_s23, %s4119_s23 }
   0x7   :  { %p4126_p3 = por %p4125_p2, %p4124_p1 }
   0x9   :  { %p4127_p4 = pnand %p4126_p3, %p4120_p0 }
   0xb   :  { %4130 = shalt.err (!%p4127_p4)
}
   0xc   :  { %s4178_s24 = smov 128   ;;  %s4179_s25 = smov 8  }
   0xd   :  { %35 = dma.hbm_to_vmem [thread:$0]  %s5492_s4, 2048, %s30_s22, [#allocation5], %s4178_s24, %s4178_s24, %s4179_s25  }
   0xe   :  { %s4180_s28 = smov [#allocation7]  }
   0xf   :  { %s41_s29 = sshll.u32 %s4180_s28, 4  ;;  %s42_s29 = int_to_ptr.vmem [resolvable:$true] %s41_s29 }
  0x10   :  { %s4139_s30 = scalar_lea.vmem %s42_s29, 2048  ;;  %p4144_p6 = scmp.lt.s32.totalorder %s42_s29, %s42_s29 }
  0x11   :  { %p4140_p5 = scmp.ne.s32.totalorder %s42_s29, %s4139_s30  ;;  %p4145_p7 = scmp.lt.s32.totalorder %s4139_s30, %s4139_s30 }
  0x13   :  { %p4146_p8 = por %p4145_p7, %p4144_p6 }
  0x15   :  { %p4147_p9 = pnand %p4146_p8, %p4140_p5 }
  0x17   :  { %4150 = shalt.err (!%p4147_p9)
}
  0x18   :  { %47 = dma.hbm_to_vmem [thread:$0]  %s5493_s5, 2048, %s42_s29, [#allocation8], %s4178_s24, %s4178_s24, %s4179_s25  }
  0x19   :  { %4171 = dma.done.wait [#allocation5], 2048  }
  0x1a   :  { %4172 = vsyncadd [#allocation5], 4294965248 }
  0x1b   :  { %4173 = dma.done.wait [#allocation8], 2048  }
  0x1c   :  { %4174 = vsyncadd [#allocation8], 4294965248  ;;  %v4232_v0 = vstv %s5488_s0  ;;  %v118_v1 = vld [vmem:[%s5491_s3 + $0x18] sm:$0xff]  ;;  %v117_v2 = vld [vmem:[%s5491_s3 + $0x10] sm:$0xff]  ;;  %v4305_v25 = vstv %s5489_s1  ;;  %vm119_vm1 = vcmask 261120  }
  0x1d   :  { %4045 = vrcp.f32 %v4232_v0  ;;  %v116_v3 = vld [vmem:[%s5491_s3 + $0x8] sm:$0xff]  ;;  %v4244_v4 = vand.u32 4294901760, %v118_v1  ;;  %v4246_v5 = vand.u32 4294901760, %v117_v2  ;;  %v115_v7 = vld [vmem:[%s5491_s3] sm:$0xff]  ;;  %v58_v18 = vld [vmem:[%s5490_s2 + $0x10] sm:$0xff] }
  0x1e   :  { %v4248_v6 = vand.u32 4294901760, %v116_v3  ;;  %v4253_v8 = vand.u32 4294901760, %v115_v7  ;;  %v56_v16 = vld [vmem:[%s5490_s2] sm:$0xff]  ;;  %v57_v17 = vld [vmem:[%s5490_s2 + $0x8] sm:$0xff]  ;;  %v59_v20 = vld [vmem:[%s5490_s2 + $0x18] sm:$0xff] }
  0x1f   :  { %3328 = vmatprep.subr.mxu0 %v4244_v4  ;;  %v4257_v9 = vsub.f32 %v118_v1, %v4244_v4  ;;  %v4260_v10 = vsub.f32 %v117_v2, %v4246_v5  ;;  %v60_v30 = vld [vmem:[%s5490_s2 + $0x20] sm:$0xff]  ;;  %v61_v31 = vld [vmem:[%s5490_s2 + $0x28] sm:$0xff]  ;;  %v62_v32 = vld [vmem:[%s5490_s2 + $0x30] sm:$0xff] }
  0x20   :  { %v4263_v11 = vsub.f32 %v116_v3, %v4248_v6  ;;  %3329 = vmatpush3.msra.mxu0 %v4244_v4  ;;  %v4267_v12 = vsub.f32 %v115_v7, %v4253_v8  ;;  %v63_v37 = vld [vmem:[%s5490_s2 + $0x38] sm:$0xff]  ;;  %s4181_s2 = smov [#allocation9]  }
  0x21   :  { %v4270_v13 = vand.u32 4294901760, %v4257_v9  ;;  %3330 = vmatprep.subr.mxu0 %v4246_v5  ;;  %v4274_v14 = vand.u32 4294901760, %v4260_v10  ;;  %s2955_s9 = sshll.u32 %s4181_s2, 4  ;;  %s2956_s9 = int_to_ptr.vmem [resolvable:$true] %s2955_s9 }
  0x22   :  { %v4277_v15 = vand.u32 4294901760, %v4263_v11  ;;  %3331 = vmatpush3.msra.mxu0 %v4246_v5  ;;  %v4290_v19 = vand.u32 4294901760, %v4267_v12  ;;  %s4151_s10 = scalar_lea.vmem %s2956_s9, 1024  ;;  %p4156_p11 = scmp.lt.s32.totalorder %s2956_s9, %s2956_s9 }
  0x23   :  { %v321_v22 = vsub.f32 %v4257_v9, %v4270_v13  ;;  %v328_v23 = vsub.f32 %v4260_v10, %v4274_v14  ;;  %3332 = vmatprep.subr.mxu0 %v4248_v6  ;;  %p4152_p10 = scmp.ne.s32.totalorder %s2956_s9, %s4151_s10  ;;  %p4157_p12 = scmp.lt.s32.totalorder %s4151_s10, %s4151_s10 }
  0x24   :  { %v335_v24 = vsub.f32 %v4263_v11, %v4277_v15  ;;  %3333 = vmatpush3.msra.mxu0 %v4248_v6  ;;  %v342_v26 = vsub.f32 %v4267_v12, %v4290_v19 }
  0x25   :  { %v322_v33 = vand.u32 4294901760, %v321_v22  ;;  %v329_v34 = vand.u32 4294901760, %v328_v23  ;;  %3334 = vmatprep.subr.mxu0 %v4253_v8  ;;  %p4158_p13 = por %p4157_p12, %p4156_p11 }
  0x26   :  { %v336_v35 = vand.u32 4294901760, %v335_v24  ;;  %3335 = vmatpush3.msra.mxu0 %v4253_v8  ;;  %v343_v38 = vand.u32 4294901760, %v342_v26 }
  0x27   :  { %3348 = vmatprep.subr.mxu1 %v322_v33  ;;  %3368 = vmatprep.subr.mxu0 %v4257_v9  ;;  %p4159_p0 = pnand %p4158_p13, %p4152_p10 }
  0x28   :  { %3349 = vmatpush3.msra.mxu1 %v322_v33 }
  0x29   :  { %3350 = vmatprep.subr.mxu1 %v329_v34 }
  0x2a   :  { %v4046_v21 = vpop.eup %4045  ;;  %3351 = vmatpush3.msra.mxu1 %v329_v34 }
  0x2b   :  { %v66_v27 = vmul.f32 %v4046_v21, %v56_v16  ;;  %v67_v28 = vmul.f32 %v4046_v21, %v57_v17  ;;  %v68_v29 = vmul.f32 %v4046_v21, %v58_v18  ;;  %v69_v36 = vmul.f32 %v4046_v21, %v59_v20  ;;  %3352 = vmatprep.subr.mxu1 %v336_v35 }
  0x2c   :  { %v70_v43 = vmul.f32 %v4046_v21, %v60_v30  ;;  %v71_v44 = vmul.f32 %v4046_v21, %v61_v31  ;;  %v4325_v45 = vmul.f32 %v4046_v21, %v62_v32  ;;  %v4327_v49 = vmul.f32 %v4046_v21, %v63_v37  ;;  %3353 = vmatpush3.msra.mxu1 %v336_v35 }
  0x2d   :  { %v74_v39 = vmax.f32 %v66_v27, -128.0  ;;  %v75_v40 = vmax.f32 %v67_v28, -128.0  ;;  %v76_v41 = vmax.f32 %v68_v29, -128.0  ;;  %v77_v42 = vmax.f32 %v69_v36, -128.0  ;;  %3354 = vmatprep.subr.mxu1 %v343_v38 }
  0x2e   :  { %v78_v51 = vmax.f32 %v70_v43, -128.0  ;;  %v79_v52 = vmax.f32 %v71_v44, -128.0  ;;  %v80_v53 = vmax.f32 %v4325_v45, -128.0  ;;  %3355 = vmatpush3.msra.mxu1 %v343_v38  ;;  %v81_v43 = vmax.f32 %v4327_v49, -128.0 }
  0x2f   :  { %v82_v46 = vmin.f32 %v74_v39, 127.0  ;;  %v83_v47 = vmin.f32 %v75_v40, 127.0  ;;  %v84_v48 = vmin.f32 %v76_v41, 127.0  ;;  %v4329_v50 = vmin.f32 %v77_v42, 127.0  ;;  %3388 = vmatprep.subr.mxu1 %v4244_v4 }
  0x30   :  { %v86_v22 = vmin.f32 %v78_v51, 127.0  ;;  %v4352_v27 = vmin.f32 %v79_v52, 127.0 }
  0x31   :  { %v3976_v54 = vand.u32 2147483647, %v82_v46  ;;  %v3978_v55 = vcvt.f32.s32 %v82_v46  ;;  %v3981_v56 = vand.u32 2147483648, %v82_v46  ;;  %v3984_v57 = vand.u32 2147483647, %v83_v47 }
  0x32   :  { %v3986_v58 = vcvt.f32.s32 %v83_v47  ;;  %v3989_v59 = vand.u32 2147483648, %v83_v47  ;;  %v3992_v60 = vand.u32 2147483647, %v84_v48  ;;  %v3994_v61 = vcvt.f32.s32 %v84_v48 }
  0x33   :  { %vm4332_vm0 = vcmp.lt.f32.partialorder %v3976_v54, 8388608.0  ;;  %v3979_v63 = vcvt.s32.f32 %v3978_v55  ;;  %vm4336_vm2 = vcmp.lt.f32.partialorder %v3984_v57, 8388608.0  ;;  %v3997_v2 = vand.u32 2147483648, %v84_v48 }
  0x34   :  { %v3987_v3 = vcvt.s32.f32 %v3986_v58  ;;  %vm4340_vm3 = vcmp.lt.f32.partialorder %v3992_v60, 8388608.0  ;;  %v3995_v16 = vcvt.s32.f32 %v3994_v61  ;;  %v4000_v17 = vand.u32 2147483647, %v4329_v50 }
  0x35   :  { %v3980_v18 = vand.u32 2147483647, %v3979_v63  ;;  %v4002_v20 = vcvt.f32.s32 %v4329_v50  ;;  %v4005_v21 = vand.u32 2147483648, %v4329_v50  ;;  %v4008_v30 = vand.u32 2147483647, %v86_v22 }
  0x36   :  { %v3988_v23 = vand.u32 2147483647, %v3987_v3  ;;  %v3996_v24 = vand.u32 2147483647, %v3995_v16  ;;  %vm4348_vm4 = vcmp.lt.f32.partialorder %v4000_v17, 8388608.0  ;;  %v4010_v31 = vcvt.f32.s32 %v86_v22 }
  0x37   :  { %v3982_v28 = vor.u32 %v3981_v56, %v3980_v18  ;;  %v4003_v29 = vcvt.s32.f32 %v4002_v20  ;;  %v4013_v34 = vand.u32 2147483648, %v86_v22  ;;  %v4016_v35 = vand.u32 2147483647, %v4352_v27 }
  0x38   :  { %v3990_v32 = vor.u32 %v3989_v59, %v3988_v23  ;;  %v3998_v33 = vor.u32 %v3997_v2, %v3996_v24  ;;  %vm4357_vm5 = vcmp.lt.f32.partialorder %v4008_v30, 8388608.0  ;;  %v4011_v39 = vcvt.s32.f32 %v4010_v31 }
  0x39   :  { %v3983_v36 = vsel %vm4332_vm0, %v3982_v28, %v82_v46  ;;  %v4004_v37 = vand.u32 2147483647, %v4003_v29  ;;  %vm4366_vm6 = vcmp.lt.f32.partialorder %v4016_v35, 8388608.0  ;;  %v4018_v54 = vcvt.f32.s32 %v4352_v27 }
  0x3a   :  { %v98_v40 = vmul.f32 %v3983_v36, %v4232_v0  ;;  %v3991_v41 = vsel %vm4336_vm2, %v3990_v32, %v83_v47  ;;  %v3999_v42 = vsel %vm4340_vm3, %v3998_v33, %v84_v48  ;;  %v4012_v51 = vand.u32 2147483647, %v4011_v39 }
  0x3b   :  { %v99_v44 = vmul.f32 %v3991_v41, %v4232_v0  ;;  %v100_v45 = vmul.f32 %v3999_v42, %v4232_v0  ;;  %v4006_v46 = vor.u32 %v4005_v21, %v4004_v37  ;;  %v4021_v55 = vand.u32 2147483648, %v4352_v27 }
  0x3c   :  { %v107_v52 = vmul.f32 %v4305_v25, %v98_v40  ;;  %v4375_v47 = vmin.f32 %v80_v53, 127.0  ;;  %v4014_v58 = vor.u32 %v4013_v34, %v4012_v51  ;;  %v4019_v61 = vcvt.s32.f32 %v4018_v54 }
  0x3d   :  { %v108_v48 = vmul.f32 %v4305_v25, %v99_v44  ;;  %v109_v56 = vmul.f32 %v4305_v25, %v100_v45  ;;  %v4007_v57 = vsel %vm4348_vm4, %v4006_v46, %v4329_v50 }
  0x3e   :  { %v121_v59 = vsel %vm119_vm1, %v107_v52, 0  ;;  %v101_v60 = vmul.f32 %v4007_v57, %v4232_v0  ;;  %v4024_v62 = vand.u32 2147483647, %v4375_v47  ;;  %v4015_v2 = vsel %vm4357_vm5, %v4014_v58, %v86_v22 }
  0x3f   :  { %v4385_v63 = vand.u32 4294901760, %v121_v59  ;;  %v124_v53 = vsel %vm119_vm1, %v108_v48, 0  ;;  %v127_v1 = vsel %vm119_vm1, %v109_v56, 0  ;;  %v102_v16 = vmul.f32 %v4015_v2, %v4232_v0 }
  0x40   :  { %v4391_v3 = vand.u32 4294901760, %v124_v53  ;;  %v4393_v50 = vand.u32 4294901760, %v127_v1  ;;  %v110_v7 = vmul.f32 %v4305_v25, %v101_v60  ;;  %v4020_v18 = vand.u32 2147483647, %v4019_v61 }
  0x41   :  { %v4398_v17 = vsub.f32 %v121_v59, %v4385_v63  ;;  %3356 = vmatprep.mubr.f32.mxu1 %v4385_v63  ;;  %vm4401_vm7 = vcmp.lt.f32.partialorder %v4024_v62, 8388608.0  ;;  %v4026_v21 = vcvt.f32.s32 %v4375_v47  ;;  %v111_v26 = vmul.f32 %v4305_v25, %v102_v16 }
  0x42   :  { %v4407_v22 = vsub.f32 %v124_v53, %v4391_v3  ;;  %3357 = vmatmul.mubr.f32.vlgmr.msra.gmra.mxu1 %v4391_v3  ;;  %v4411_v23 = vsub.f32 %v127_v1, %v4393_v50  ;;  %v130_v24 = vsel %vm119_vm1, %v110_v7, 0  ;;  %v4022_v30 = vor.u32 %v4021_v55, %v4020_v18 }
  0x43   :  { %v215_v28 = vand.u32 4294901760, %v4398_v17  ;;  %3389 = vmatpush3.msra.mxu1 %v4244_v4  ;;  %3359 = vmatprep.mubr.f32.mxu1 %v4393_v50  ;;  %v4418_v29 = vand.u32 4294901760, %v130_v24  ;;  %v4027_v31 = vcvt.s32.f32 %v4026_v21  ;;  %v133_v34 = vsel %vm119_vm1, %v111_v26, 0 }
  0x44   :  { %v225_v32 = vand.u32 4294901760, %v4407_v22  ;;  %v235_v33 = vand.u32 4294901760, %v4411_v23  ;;  %3390 = vmatprep.subr.mxu1 %v4246_v5  ;;  %v4029_v35 = vand.u32 2147483648, %v4375_v47  ;;  %v4432_v38 = vand.u32 4294901760, %v133_v34 }
  0x45   :  { %v216_v36 = vsub.f32 %v4398_v17, %v215_v28  ;;  %v4429_v37 = vsub.f32 %v130_v24, %v4418_v29  ;;  %3391 = vmatpush3.msra.mxu1 %v4246_v5  ;;  %v4023_v39 = vsel %vm4366_vm6, %v4022_v30, %v4352_v27  ;;  %v4028_v44 = vand.u32 2147483647, %v4027_v31 }
  0x46   :  { %v226_v40 = vsub.f32 %v4407_v22, %v225_v32  ;;  %v236_v41 = vsub.f32 %v4411_v23, %v235_v33  ;;  %3360 = vmatmul.mubr.f32.gmra.mxu1 %v4418_v29  ;;  %v103_v42 = vmul.f32 %v4023_v39, %v4232_v0  ;;  %3392 = vmatprep.subr.mxu1 %v4248_v6  ;;  %v89_v57 = vmin.f32 %v81_v43, 127.0 }
  0x47   :  { %v217_v45 = vand.u32 4294901760, %v216_v36  ;;  %v245_v46 = vand.u32 4294901760, %v4429_v37  ;;  %v4448_v27 = vsub.f32 %v133_v34, %v4432_v38  ;;  %3362 = vmatprep.mubr.f32.mxu1 %v4432_v38  ;;  %3393 = vmatpush3.msra.mxu1 %v4248_v6  ;;  %v4030_v55 = vor.u32 %v4029_v35, %v4028_v44 }
  0x48   :  { %v227_v51 = vand.u32 4294901760, %v226_v40  ;;  %v237_v52 = vand.u32 4294901760, %v236_v41  ;;  %v112_v54 = vmul.f32 %v4305_v25, %v103_v42  ;;  %3394 = vmatprep.subr.mxu1 %v4253_v8  ;;  %v4034_v53 = vcvt.f32.s32 %v89_v57 }
  0x49   :  { %3336 = vmatprep.mubr.f32.mxu0 %v217_v45  ;;  %v246_v48 = vsub.f32 %v4429_v37, %v245_v46  ;;  %v255_v56 = vand.u32 4294901760, %v4448_v27  ;;  %3395 = vmatpush3.msra.mxu1 %v4253_v8  ;;  %v4031_v58 = vsel %vm4401_vm7, %v4030_v55, %v4375_v47  ;;  %v4032_v2 = vand.u32 2147483647, %v89_v57 }
  0x4a   :  { %3337 = vmatmul.mubr.f32.vlgmr.msra.gmra.mxu0 %v227_v51  ;;  %v136_v49 = vsel %vm119_vm1, %v112_v54, 0  ;;  %3428 = vmatprep.subr.mxu1 %v4244_v4  ;;  %v104_v62 = vmul.f32 %v4031_v58, %v4232_v0  ;;  %v4035_v7 = vcvt.s32.f32 %v4034_v53  ;;  %v4037_v16 = vand.u32 2147483648, %v89_v57  ;;  %v987_v54 = vld [vmem:[#allocation4 + $0x48] sm:$0xff]  ;;  %v986_v58 = vld [vmem:[#allocation4 + $0x40] sm:$0xff] }
  0x4b   :  { %3369 = vmatpush3.msra.mxu0 %v4257_v9  ;;  %3339 = vmatprep.mubr.f32.mxu0 %v237_v52  ;;  %v247_v59 = vand.u32 4294901760, %v246_v48  ;;  %v256_v60 = vsub.f32 %v4448_v27, %v255_v56  ;;  %v4469_v61 = vand.u32 4294901760, %v136_v49  ;;  %vm4033_vm8 = vcmp.lt.f32.partialorder %v4032_v2, 8388608.0 }
  0x4c   :  { %3370 = vmatprep.subr.mxu0 %v4260_v10  ;;  %v113_v9 = vmul.f32 %v4305_v25, %v104_v62  ;;  %v4036_v21 = vand.u32 2147483647, %v4035_v7  ;;  %v4610_v62 = vand.u32 4294901760, %v986_v58 }
  0x4d   :  { %3371 = vmatpush3.msra.mxu0 %v4260_v10  ;;  %v257_v47 = vand.u32 4294901760, %v256_v60  ;;  %v4475_v1 = vsub.f32 %v136_v49, %v4469_v61  ;;  %3363 = vmatmul.mubr.f32.gmra.mxu1 %v4469_v61 }
  0x4e   :  { %3340 = vmatmul.mubr.f32.gmra.mxu0 %v247_v59  ;;  %3372 = vmatprep.subr.mxu0 %v4263_v11  ;;  %v139_v10 = vsel %vm119_vm1, %v113_v9, 0  ;;  %v4038_v30 = vor.u32 %v4037_v16, %v4036_v21  ;;  %v4622_v2 = vsub.f32 %v986_v58, %v4610_v62 }
  0x4f   :  { %3342 = vmatprep.mubr.f32.mxu0 %v257_v47  ;;  %v265_v18 = vand.u32 4294901760, %v4475_v1  ;;  %3373 = vmatpush3.msra.mxu0 %v4263_v11  ;;  %v4483_v20 = vand.u32 4294901760, %v139_v10  ;;  %v985_v47 = vld [vmem:[#allocation4 + $0x38] sm:$0xff] }
  0x50   :  { %3374 = vmatprep.subr.mxu0 %v4267_v12  ;;  %v4039_v34 = vsel %vm4033_vm8, %v4038_v30, %v89_v57  ;;  %v4597_v57 = vand.u32 4294901760, %v987_v54  ;;  %5654 = vst [vmem:[#allocation22_spill] sm:$0xff] %v4622_v2  ;;  %v4624_v7 = vand.u32 4294901760, %v985_v47  ;;  %v4631_v21 = vand.u32 4294901760, %v4622_v2  ;;  %v983_v30 = vld [vmem:[#allocation4 + $0x28] sm:$0xff] }
  0x51   :  { %v266_v24 = vsub.f32 %v4475_v1, %v265_v18  ;;  %3375 = vmatpush3.msra.mxu0 %v4267_v12  ;;  %v274_v26 = vsub.f32 %v139_v10, %v4483_v20  ;;  %3365 = vmatprep.mubr.f32.mxu1 %v4483_v20  ;;  %v105_v35 = vmul.f32 %v4039_v34, %v4232_v0 }
  0x52   :  { %3408 = vmatprep.subr.mxu0 %v4270_v13  ;;  %5655 = vst [vmem:[#allocation23_spill] sm:$0xff] %v4631_v21 }
  0x53   :  { %v267_v11 = vand.u32 4294901760, %v266_v24  ;;  %v275_v31 = vand.u32 4294901760, %v274_v26  ;;  %v114_v39 = vmul.f32 %v4305_v25, %v105_v35  ;;  %v4634_v24 = vsub.f32 %v985_v47, %v4624_v7 }
  0x54   :  { %v4645_v35 = vand.u32 4294901760, %v983_v30 }
  0x55   :  { %3343 = vmatmul.mubr.f32.gmra.mxu0 %v267_v11  ;;  %v276_v36 = vsub.f32 %v274_v26, %v275_v31  ;;  %v142_v41 = vsel %vm119_vm1, %v114_v39, 0  ;;  %5656 = vst [vmem:[#allocation24_spill] sm:$0xff] %v4634_v24  ;;  %v4643_v34 = vand.u32 4294901760, %v4634_v24  ;;  %v982_v39 = vld [vmem:[#allocation4 + $0x20] sm:$0xff] }
  0x56   :  { %v283_v12 = vand.u32 4294901760, %v142_v41  ;;  %5659 = vst [vmem:[#allocation27_spill] sm:$0xff] %v4645_v35 }
  0x57   :  { %v277_v40 = vand.u32 4294901760, %v276_v36  ;;  %5658 = vst [vmem:[#allocation26_spill] sm:$0xff] %v4643_v34 }
  0x58   :  { %v284_v42 = vsub.f32 %v142_v41, %v283_v12  ;;  %3366 = vmatmul.mubr.f32.gmra.mxu1 %v283_v12  ;;  %v1215_v41 = vsub.f32 %v4634_v24, %v4643_v34 }
  0x59   :  { %3345 = vmatprep.mubr.f32.mxu0 %v277_v40  ;;  %3396 = vmatprep.mubr.f32.mxu1 %v215_v28 }
  0x5a   :  { %v285_v44 = vand.u32 4294901760, %v284_v42 }
  0x5c   :  { %v286_v45 = vsub.f32 %v284_v42, %v285_v44  ;;  %3397 = vmatmul.mubr.f32.vlgmr.msra.gmra.mxu1 %v225_v32 }
  0x5d   :  { %3429 = vmatpush3.msra.mxu1 %v4244_v4  ;;  %3399 = vmatprep.mubr.f32.mxu1 %v235_v33  ;;  %v993_v4 = vld [vmem:[#allocation4 + $0x78] sm:$0xff] }
  0x5e   :  { %v287_v0 = vand.u32 4294901760, %v286_v45  ;;  %3430 = vmatprep.subr.mxu1 %v4246_v5  ;;  %v981_v45 = vld [vmem:[#allocation4 + $0x18] sm:$0xff] }
  0x5f   :  { %3431 = vmatpush3.msra.mxu1 %v4246_v5  ;;  %v4538_v5 = vand.u32 4294901760, %v993_v4 }
  0x60   :  { %3346 = vmatmul.mubr.f32.gmra.mxu0 %v287_v0  ;;  %3400 = vmatmul.mubr.f32.gmra.mxu1 %v245_v46  ;;  %v1216_v0 = vand.u32 4294901760, %v1215_v41 }
  0x61   :  { %3376 = vmatprep.mubr.f32.mxu0 %v4398_v17  ;;  %3402 = vmatprep.mubr.f32.mxu1 %v255_v56 }
  0x62   :  { %3432 = vmatprep.subr.mxu1 %v4248_v6 }
  0x63   :  { %3433 = vmatpush3.msra.mxu1 %v4248_v6  ;;  %v992_v6 = vld [vmem:[#allocation4 + $0x70] sm:$0xff] }
  0x64   :  { %3377 = vmatmul.mubr.f32.vlgmr.msra.gmra.mxu0 %v4407_v22  ;;  %3403 = vmatmul.mubr.f32.gmra.mxu1 %v265_v18  ;;  %v984_v18 = vld [vmem:[#allocation4 + $0x30] sm:$0xff] }
  0x65   :  { %3409 = vmatpush3.msra.mxu0 %v4270_v13  ;;  %3379 = vmatprep.mubr.f32.mxu0 %v4411_v23  ;;  %v4543_v13 = vand.u32 4294901760, %v992_v6  ;;  %v989_v23 = vld [vmem:[#allocation4 + $0x58] sm:$0xff] }
  0x66   :  { %3410 = vmatprep.subr.mxu0 %v4274_v14  ;;  %3405 = vmatprep.mubr.f32.mxu1 %v275_v31  ;;  %v1208_v31 = vsub.f32 %v4622_v2, %v4631_v21 }
  0x67   :  { %3411 = vmatpush3.msra.mxu0 %v4274_v14  ;;  %3434 = vmatprep.subr.mxu1 %v4253_v8  ;;  %v991_v14 = vld [vmem:[#allocation4 + $0x68] sm:$0xff] }
  0x68   :  { %3380 = vmatmul.mubr.f32.gmra.mxu0 %v4429_v37  ;;  %3412 = vmatprep.subr.mxu0 %v4277_v15  ;;  %v4553_v25 = vand.u32 4294901760, %v991_v14  ;;  %v4578_v37 = vand.u32 4294901760, %v989_v23  ;;  %v1209_v40 = vand.u32 4294901760, %v1208_v31 }
  0x69   :  { %3382 = vmatprep.mubr.f32.mxu0 %v4448_v27  ;;  %3413 = vmatpush3.msra.mxu0 %v4277_v15 }
  0x6a   :  { %3414 = vmatprep.subr.mxu0 %v4290_v19  ;;  %3406 = vmatmul.mubr.f32.gmra.mxu1 %v285_v44  ;;  %v4563_v17 = vsub.f32 %v991_v14, %v4553_v25  ;;  %v4589_v52 = vsub.f32 %v989_v23, %v4578_v37  ;;  %v4670_v14 = vand.u32 4294901760, %v981_v45 }
  0x6b   :  { %3415 = vmatpush3.msra.mxu0 %v4290_v19  ;;  %3435 = vmatpush3.msra.mxu1 %v4253_v8  ;;  %v4541_v8 = vsub.f32 %v993_v4, %v4538_v5  ;;  %v4551_v19 = vsub.f32 %v992_v6, %v4543_v13 }
  0x6c   :  { %3383 = vmatmul.mubr.f32.gmra.mxu0 %v4475_v1  ;;  %3436 = vmatprep.mubr.f32.mxu1 %v4385_v63  ;;  %v4572_v32 = vand.u32 4294901760, %v4563_v17  ;;  %v4601_v49 = vand.u32 4294901760, %v4589_v52  ;;  %5666 = vst [vmem:[#allocation34_spill] sm:$0xff] %v4670_v14 }
  0x6d   :  { %3385 = vmatprep.mubr.f32.mxu0 %v274_v26  ;;  %3448 = vmatprep.subr.mxu0 %v4538_v5  ;;  %v4548_v15 = vand.u32 4294901760, %v4541_v8  ;;  %v4637_v26 = vand.u32 4294901760, %v984_v18 }
  0x6e   :  { %3437 = vmatmul.mubr.f32.vlgmr.msra.gmra.mxu1 %v4391_v3  ;;  %5647 = vst [vmem:[#allocation15_spill] sm:$0xff] %v4572_v32  ;;  %v1173_v27 = vsub.f32 %v4563_v17, %v4572_v32  ;;  %5650 = vst [vmem:[#allocation18_spill] sm:$0xff] %v4601_v49  ;;  %v1187_v53 = vsub.f32 %v4589_v52, %v4601_v49 }
  0x6f   :  { %3439 = vmatprep.mubr.f32.mxu1 %v4393_v50  ;;  %5645 = vst [vmem:[#allocation13_spill] sm:$0xff] %v4548_v15  ;;  %5657 = vst [vmem:[#allocation25_spill] sm:$0xff] %v4637_v26  ;;  %v4649_v36 = vsub.f32 %v984_v18, %v4637_v26 }
  0x70   :  { %3386 = vmatmul.mubr.f32.gmra.mxu0 %v284_v42  ;;  %v1174_v55 = vand.u32 4294901760, %v1173_v27  ;;  %v1188_v16 = vand.u32 4294901760, %v1187_v53  ;;  %v4657_v42 = vand.u32 4294901760, %v982_v39  ;;  %v979_v27 = vld [vmem:[#allocation4 + $0x8] sm:$0xff]  ;;  %v978_v53 = vld [vmem:[#allocation4] sm:$0xff] }
  0x71   :  { %3416 = vmatprep.mubr.f32.mxu0 %v4385_v63  ;;  %v990_v63 = vld [vmem:[#allocation4 + $0x60] sm:$0xff]  ;;  %5660 = vst [vmem:[#allocation28_spill] sm:$0xff] %v4649_v36  ;;  %v4661_v44 = vand.u32 4294901760, %v4649_v36  ;;  %v4705_v18 = vand.u32 4294901760, %v978_v53 }
  0x72   :  { %3440 = vmatmul.mubr.f32.gmra.mxu1 %v4418_v29  ;;  %v4565_v22 = vand.u32 4294901760, %v990_v63  ;;  %5662 = vst [vmem:[#allocation30_spill] sm:$0xff] %v4657_v42  ;;  %v4668_v6 = vsub.f32 %v982_v39, %v4657_v42 }
  0x73   :  { %3442 = vmatprep.mubr.f32.mxu1 %v4432_v38  ;;  %5663 = vst [vmem:[#allocation31_spill] sm:$0xff] %v4661_v44  ;;  %5674 = vst [vmem:[#allocation42_spill] sm:$0xff] %v4705_v18 }
  0x74   :  { %3417 = vmatmul.mubr.f32.vlgmr.msra.gmra.mxu0 %v4391_v3  ;;  %v1159_v3 = vsub.f32 %v4541_v8, %v4548_v15  ;;  %v4575_v33 = vsub.f32 %v990_v63, %v4565_v22  ;;  %5665 = vst [vmem:[#allocation33_spill] sm:$0xff] %v4668_v6  ;;  %v1222_v63 = vsub.f32 %v4649_v36, %v4661_v44 }
  0x75   :  { %3419 = vmatprep.mubr.f32.mxu0 %v4393_v50  ;;  %3449 = vmatpush3.msra.mxu0 %v4538_v5  ;;  %v4560_v50 = vand.u32 4294901760, %v4551_v19 }
  0x76   :  { %3443 = vmatmul.mubr.f32.gmra.mxu1 %v4469_v61  ;;  %3450 = vmatprep.subr.mxu0 %v4543_v13  ;;  %v1160_v28 = vand.u32 4294901760, %v1159_v3  ;;  %v4584_v43 = vand.u32 4294901760, %v4575_v33  ;;  %v980_v3 = vld [vmem:[#allocation4 + $0x10] sm:$0xff] }
  0x77   :  { %3445 = vmatprep.mubr.f32.mxu1 %v4483_v20  ;;  %3451 = vmatpush3.msra.mxu0 %v4543_v13  ;;  %5646 = vst [vmem:[#allocation14_spill] sm:$0xff] %v4560_v50 }
  0x78   :  { %3420 = vmatmul.mubr.f32.gmra.mxu0 %v4418_v29  ;;  %3452 = vmatprep.subr.mxu0 %v4553_v25  ;;  %v1166_v29 = vsub.f32 %v4551_v19, %v4560_v50  ;;  %5648 = vst [vmem:[#allocation16_spill] sm:$0xff] %v4584_v43  ;;  %v1180_v48 = vsub.f32 %v4575_v33, %v4584_v43 }
  0x79   :  { %3422 = vmatprep.mubr.f32.mxu0 %v4432_v38  ;;  %3453 = vmatpush3.msra.mxu0 %v4553_v25  ;;  %v988_v38 = vld [vmem:[#allocation4 + $0x50] sm:$0xff] }
  0x7a   :  { %3446 = vmatmul.mubr.f32.gmra.mxu1 %v283_v12  ;;  %3454 = vmatprep.subr.mxu0 %v4565_v22  ;;  %v1167_v46 = vand.u32 4294901760, %v1166_v29  ;;  %v4586_v51 = vand.u32 4294901760, %v988_v38  ;;  %v1181_v59 = vand.u32 4294901760, %v1180_v48  ;;  %v4682_v29 = vsub.f32 %v981_v45, %v4670_v14 }
  0x7b   :  { %3455 = vmatpush3.msra.mxu0 %v4565_v22  ;;  %3492 = vmatprep.subr.mxu1 %v1160_v28 }
  0x7c   :  { %3423 = vmatmul.mubr.f32.gmra.mxu0 %v4469_v61  ;;  %3493 = vmatpush3.msra.mxu1 %v1160_v28  ;;  %v4595_v56 = vsub.f32 %v988_v38, %v4586_v51  ;;  %v4608_v61 = vsub.f32 %v987_v54, %v4597_v57  ;;  %v4679_v28 = vand.u32 4294901760, %v4668_v6  ;;  %5668 = vst [vmem:[#allocation36_spill] sm:$0xff] %v4682_v29  ;;  %v4684_v38 = vand.u32 4294901760, %v980_v3 }
  0x7d   :  { %3425 = vmatprep.mubr.f32.mxu0 %v4483_v20  ;;  %3456 = vmatprep.subr.mxu0 %v4578_v37  ;;  %v4691_v48 = vand.u32 4294901760, %v4682_v29 }
  0x7e   :  { %3494 = vmatprep.subr.mxu1 %v1167_v46  ;;  %5649 = vst [vmem:[#allocation17_spill] sm:$0xff] %v4595_v56  ;;  %3457 = vmatpush3.msra.mxu0 %v4578_v37  ;;  %v4605_v60 = vand.u32 4294901760, %v4595_v56  ;;  %5652 = vst [vmem:[#allocation20_spill] sm:$0xff] %v4608_v61  ;;  %v4619_v9 = vand.u32 4294901760, %v4608_v61  ;;  %v4694_v58 = vsub.f32 %v980_v3, %v4684_v38 }
  0x7f   :  { %3495 = vmatpush3.msra.mxu1 %v1167_v46  ;;  %3458 = vmatprep.subr.mxu0 %v4586_v51  ;;  %5667 = vst [vmem:[#allocation35_spill] sm:$0xff] %v4679_v28  ;;  %5669 = vst [vmem:[#allocation37_spill] sm:$0xff] %v4684_v38  ;;  %v1223_v46 = vand.u32 4294901760, %v1222_v63 }
  0x80   :  { %3426 = vmatmul.mubr.f32.gmra.mxu0 %v283_v12  ;;  %3496 = vmatprep.subr.mxu1 %v1174_v55  ;;  %5651 = vst [vmem:[#allocation19_spill] sm:$0xff] %v4605_v60  ;;  %v1194_v1 = vsub.f32 %v4595_v56, %v4605_v60  ;;  %5653 = vst [vmem:[#allocation21_spill] sm:$0xff] %v4619_v9  ;;  %v1201_v20 = vsub.f32 %v4608_v61, %v4619_v9 }
  0x81   :  { %3459 = vmatpush3.msra.mxu0 %v4586_v51  ;;  %3497 = vmatpush3.msra.mxu1 %v1174_v55  ;;  %v4655_v12 = vsub.f32 %v983_v30, %v4645_v35  ;;  %v1236_v55 = vsub.f32 %v4668_v6, %v4679_v28  ;;  %5670 = vst [vmem:[#allocation38_spill] sm:$0xff] %v4691_v48  ;;  %5671 = vst [vmem:[#allocation39_spill] sm:$0xff] %v4694_v58 }
  0x82   :  { %3460 = vmatprep.subr.mxu0 %v4597_v57  ;;  %3498 = vmatprep.subr.mxu1 %v1181_v59  ;;  %v1195_v10 = vand.u32 4294901760, %v1194_v1  ;;  %v1202_v11 = vand.u32 4294901760, %v1201_v20  ;;  %v1243_v1 = vsub.f32 %v4682_v29, %v4691_v48 }
  0x83   :  { %3461 = vmatpush3.msra.mxu0 %v4597_v57  ;;  %3499 = vmatpush3.msra.mxu1 %v1181_v59  ;;  %5661 = vst [vmem:[#allocation29_spill] sm:$0xff] %v4655_v12  ;;  %v4665_v4 = vand.u32 4294901760, %v4655_v12  ;;  %v4697_v59 = vand.u32 4294901760, %v979_v27  ;;  %v1237_v47 = vand.u32 4294901760, %v1236_v55 }
  0x84   :  { %3462 = vmatprep.subr.mxu0 %v4610_v62  ;;  %3500 = vmatprep.subr.mxu1 %v1188_v16  ;;  %v1244_v20 = vand.u32 4294901760, %v1243_v1 }
  0x85   :  { %3463 = vmatpush3.msra.mxu0 %v4610_v62  ;;  %3501 = vmatpush3.msra.mxu1 %v1188_v16  ;;  %5664 = vst [vmem:[#allocation32_spill] sm:$0xff] %v4665_v4  ;;  %v1229_v23 = vsub.f32 %v4655_v12, %v4665_v4  ;;  %5672 = vst [vmem:[#allocation40_spill] sm:$0xff] %v4697_v59  ;;  %v4703_v16 = vand.u32 4294901760, %v4694_v58 }
  0x86   :  { %3464 = vmatprep.subr.mxu0 %v4624_v7  ;;  %3502 = vmatprep.subr.mxu1 %v1195_v10 }
  0x87   :  { %3465 = vmatpush3.msra.mxu0 %v4624_v7  ;;  %3503 = vmatpush3.msra.mxu1 %v1195_v10  ;;  %v1230_v54 = vand.u32 4294901760, %v1229_v23  ;;  %5673 = vst [vmem:[#allocation41_spill] sm:$0xff] %v4703_v16  ;;  %v4709_v10 = vsub.f32 %v979_v27, %v4697_v59  ;;  %v1250_v30 = vsub.f32 %v4694_v58, %v4703_v16 }
  0x88   :  { %3466 = vmatprep.subr.mxu0 %v4637_v26  ;;  %3504 = vmatprep.subr.mxu1 %v1202_v11 }
  0x89   :  { %3467 = vmatpush3.msra.mxu0 %v4637_v26  ;;  %3505 = vmatpush3.msra.mxu1 %v1202_v11  ;;  %5675 = vst [vmem:[#allocation43_spill] sm:$0xff] %v4709_v10  ;;  %v4715_v11 = vsub.f32 %v978_v53, %v4705_v18  ;;  %v4719_v31 = vand.u32 4294901760, %v4709_v10  ;;  %v1251_v39 = vand.u32 4294901760, %v1250_v30 }
  0x8a   :  { %3468 = vmatprep.subr.mxu0 %v4645_v35  ;;  %3506 = vmatprep.subr.mxu1 %v1209_v40 }
  0x8b   :  { %3469 = vmatpush3.msra.mxu0 %v4645_v35  ;;  %3507 = vmatpush3.msra.mxu1 %v1209_v40  ;;  %5676 = vst [vmem:[#allocation44_spill] sm:$0xff] %v4715_v11  ;;  %5677 = vst [vmem:[#allocation45_spill] sm:$0xff] %v4719_v31  ;;  %v4723_v40 = vand.u32 4294901760, %v4715_v11  ;;  %v1257_v41 = vsub.f32 %v4709_v10, %v4719_v31 }
  0x8c   :  { %3470 = vmatprep.subr.mxu0 %v4657_v42  ;;  %3508 = vmatprep.subr.mxu1 %v1216_v0 }
  0x8d   :  { %3471 = vmatpush3.msra.mxu0 %v4657_v42  ;;  %3509 = vmatpush3.msra.mxu1 %v1216_v0  ;;  %5678 = vst [vmem:[#allocation46_spill] sm:$0xff] %v4723_v40  ;;  %v1264_v45 = vsub.f32 %v4715_v11, %v4723_v40  ;;  %v1258_v0 = vand.u32 4294901760, %v1257_v41 }
  0x8e   :  { %3472 = vmatprep.subr.mxu0 %v4670_v14  ;;  %3510 = vmatprep.subr.mxu1 %v1223_v46 }
  0x8f   :  { %3473 = vmatpush3.msra.mxu0 %v4670_v14  ;;  %3511 = vmatpush3.msra.mxu1 %v1223_v46  ;;  %v1265_v63 = vand.u32 4294901760, %v1264_v45 }
  0x90   :  { %3474 = vmatprep.subr.mxu0 %v4684_v38  ;;  %3512 = vmatprep.subr.mxu1 %v1230_v54 }
  0x91   :  { %3475 = vmatpush3.msra.mxu0 %v4684_v38  ;;  %3513 = vmatpush3.msra.mxu1 %v1230_v54 }
  0x92   :  { %3476 = vmatprep.subr.mxu0 %v4697_v59  ;;  %3514 = vmatprep.subr.mxu1 %v1237_v47 }
  0x93   :  { %3477 = vmatpush3.msra.mxu0 %v4697_v59  ;;  %3515 = vmatpush3.msra.mxu1 %v1237_v47 }
  0x94   :  { %3478 = vmatprep.subr.mxu0 %v4705_v18  ;;  %3516 = vmatprep.subr.mxu1 %v1244_v20 }
  0x95   :  { %3479 = vmatpush3.msra.mxu0 %v4705_v18  ;;  %3517 = vmatpush3.msra.mxu1 %v1244_v20 }
  0x96   :  { %3536 = vmatprep.subr.mxu0 %v4541_v8  ;;  %3518 = vmatprep.subr.mxu1 %v1251_v39 }
  0x97   :  { %3519 = vmatpush3.msra.mxu1 %v1251_v39 }
  0x98   :  { %3520 = vmatprep.subr.mxu1 %v1258_v0 }
  0x99   :  { %3521 = vmatpush3.msra.mxu1 %v1258_v0 }
  0x9a   :  { %3522 = vmatprep.subr.mxu1 %v1265_v63 }
  0x9b   :  { %3523 = vmatpush3.msra.mxu1 %v1265_v63 }
  0x9c   :  { %3580 = vmatprep.subr.mxu1 %v4538_v5 }
 0x102   :  { %v3358_v3 = vpop.f32.mrf.mxu1 }
 0x104   :  { %v380_v23 = vpop.f32.mrf.mxu1 }
 0x106   :  { %v3361_v27 = vpop.f32.mrf.mxu1 }
 0x108   :  { %v392_v55 = vpop.f32.mrf.mxu1 }
 0x10a   :  { %v3338_v46 = vpop.f32.mrf.mxu0 }
 0x10b   :  { %v387_v32 = vadd.f32 %v3358_v3, %v3338_v46 }
 0x10c   :  { %v219_v54 = vpop.f32.mrf.mxu0 }
 0x10d   :  { %v3364_v47 = vpop.f32.mrf.mxu1  ;;  %v381_v11 = vadd.f32 %v380_v23, %v219_v54 }
 0x10e   :  { %v3341_v53 = vpop.f32.mrf.mxu0 }
 0x10f   :  { %v404_v20 = vpop.f32.mrf.mxu1  ;;  %v399_v18 = vadd.f32 %v3361_v27, %v3341_v53 }
 0x110   :  { %v239_v1 = vpop.f32.mrf.mxu0 }
 0x111   :  { %v393_v38 = vadd.f32 %v392_v55, %v239_v1 }
 0x115   :  { %v3344_v30 = vpop.f32.mrf.mxu0 }
 0x116   :  { %v411_v24 = vadd.f32 %v3364_v47, %v3344_v30 }
 0x117   :  { %v259_v45 = vpop.f32.mrf.mxu0 }
 0x118   :  { %v3367_v41 = vpop.f32.mrf.mxu1  ;;  %v405_v3 = vadd.f32 %v404_v20, %v259_v45 }
 0x11a   :  { %v416_v39 = vpop.f32.mrf.mxu1 }
 0x11c   :  { %v3398_v40 = vpop.f32.mrf.mxu1 }
 0x11e   :  { %v628_v0 = vpop.f32.mrf.mxu1 }
 0x120   :  { %v3347_v31 = vpop.f32.mrf.mxu0  ;;  %v3401_v63 = vpop.f32.mrf.mxu1 }
 0x122   :  { %v279_v16 = vpop.f32.mrf.mxu0  ;;  %v644_v48 = vpop.f32.mrf.mxu1 }
 0x124   :  { %v3378_v28 = vpop.f32.mrf.mxu0  ;;  %v3404_v4 = vpop.f32.mrf.mxu1 }
 0x125   :  { %v510_v10 = vadd.f32 %v3378_v28, %v387_v32 }
 0x126   :  { %v502_v44 = vpop.f32.mrf.mxu0  ;;  %v660_v34 = vpop.f32.mrf.mxu1 }
 0x127   :  { %v503_v6 = vadd.f32 %v502_v44, %v381_v11  ;;  %v637_v36 = vadd.f32 %v3398_v40, %v510_v10  ;;  %v423_v44 = vadd.f32 %v3367_v41, %v3347_v31 }
 0x128   :  { %v3381_v21 = vpop.f32.mrf.mxu0 }
 0x129   :  { %v524_v14 = vadd.f32 %v3381_v21, %v399_v18  ;;  %v629_v35 = vadd.f32 %v628_v0, %v503_v6  ;;  %v417_v6 = vadd.f32 %v416_v39, %v279_v16 }
 0x12a   :  { %v516_v9 = vpop.f32.mrf.mxu0  ;;  %v3407_v60 = vpop.f32.mrf.mxu1 }
 0x12b   :  { %v517_v61 = vadd.f32 %v516_v9, %v393_v38  ;;  %v653_v32 = vadd.f32 %v3401_v63, %v524_v14 }
 0x12c   :  { %v3384_v49 = vpop.f32.mrf.mxu0  ;;  %v676_v43 = vpop.f32.mrf.mxu1 }
 0x12d   :  { %v538_v46 = vadd.f32 %v3384_v49, %v411_v24  ;;  %v645_v55 = vadd.f32 %v644_v48, %v517_v61 }
 0x12e   :  { %v530_v50 = vpop.f32.mrf.mxu0  ;;  %v3438_v15 = vpop.f32.mrf.mxu1 }
 0x12f   :  { %v531_v11 = vadd.f32 %v530_v50, %v405_v3  ;;  %v669_v9 = vadd.f32 %v3404_v4, %v538_v46 }
 0x130   :  { %v3387_v58 = vpop.f32.mrf.mxu0  ;;  %v884_v29 = vpop.f32.mrf.mxu1 }
 0x132   :  { %v544_v59 = vpop.f32.mrf.mxu0  ;;  %v3441_v12 = vpop.f32.mrf.mxu1 }
 0x133   :  { %v545_v50 = vadd.f32 %v544_v59, %v417_v6 }
 0x134   :  { %v3418_v42 = vpop.f32.mrf.mxu0  ;;  %v896_v2 = vpop.f32.mrf.mxu1 }
 0x135   :  { %v774_v26 = vadd.f32 %v3418_v42, %v637_v36  ;;  %v552_v36 = vadd.f32 %v3387_v58, %v423_v44 }
 0x136   :  { %v767_v56 = vpop.f32.mrf.mxu0  ;;  %v3444_v23 = vpop.f32.mrf.mxu1 }
 0x137   :  { %v4732_v28 = vadd.f32 %v3438_v15, %v774_v26  ;;  %v768_v27 = vadd.f32 %v767_v56, %v629_v35  ;;  %v661_v56 = vadd.f32 %v660_v34, %v531_v11  ;;  %v685_v48 = vadd.f32 %v3407_v60, %v552_v36 }
 0x138   :  { %v3421_v54 = vpop.f32.mrf.mxu0  ;;  %v908_v49 = vpop.f32.mrf.mxu1 }
 0x139   :  { %v931_v21 = vsub.f32 0.0, %v4732_v28  ;;  %v4735_v18 = vadd.f32 %v884_v29, %v768_v27  ;;  %v786_v10 = vadd.f32 %v3421_v54, %v653_v32 }
 0x13a   :  { %v779_v42 = vpop.f32.mrf.mxu0  ;;  %v3447_v58 = vpop.f32.mrf.mxu1 }
 0x13b   :  { %v940_v24 = vmul.f32 1.442695, %v931_v21  ;;  %v930_v14 = vsub.f32 0.0, %v4735_v18  ;;  %v780_v15 = vadd.f32 %v779_v42, %v645_v55  ;;  %v4738_v26 = vadd.f32 %v3441_v12, %v786_v10 }
 0x13c   :  { %v3424_v35 = vpop.f32.mrf.mxu0  ;;  %v677_v12 = vadd.f32 %v676_v43, %v545_v50  ;;  %v920_v30 = vpop.f32.mrf.mxu1 }
 0x13d   :  { %4047 = vpow2.f32 %v940_v24  ;;  %v938_v61 = vmul.f32 1.442695, %v930_v14  ;;  %v933_v29 = vsub.f32 0.0, %v4738_v26  ;;  %v798_v38 = vadd.f32 %v3424_v35, %v669_v9 }
 0x13e   :  { %v4741_v16 = vadd.f32 %v896_v2, %v780_v15  ;;  %v791_v4 = vpop.f32.mrf.mxu0 }
 0x13f   :  { %4049 = vpow2.f32 %v938_v61  ;;  %v944_v31 = vmul.f32 1.442695, %v933_v29  ;;  %v792_v40 = vadd.f32 %v791_v4, %v661_v56  ;;  %v4743_v53 = vadd.f32 %v3444_v23, %v798_v38 }
 0x140   :  { %v932_v34 = vsub.f32 0.0, %v4741_v16  ;;  %v3427_v59 = vpop.f32.mrf.mxu0 }
 0x141   :  { %4051 = vpow2.f32 %v944_v31  ;;  %v935_v47 = vsub.f32 0.0, %v4743_v53  ;;  %v810_v1 = vadd.f32 %v3427_v59, %v685_v48  ;;  %v4747_v20 = vadd.f32 %v908_v49, %v792_v40 }
 0x142   :  { %v942_v60 = vmul.f32 1.442695, %v932_v34  ;;  %v803_v2 = vpop.f32.mrf.mxu0 }
 0x143   :  { %v948_v41 = vmul.f32 1.442695, %v935_v47  ;;  %v934_v39 = vsub.f32 0.0, %v4747_v20  ;;  %v804_v45 = vadd.f32 %v803_v2, %v677_v12  ;;  %v4750_v0 = vadd.f32 %v3447_v58, %v810_v1 }
 0x144   :  { %4053 = vpow2.f32 %v942_v60 }
 0x145   :  { %4055 = vpow2.f32 %v948_v41  ;;  %v946_v43 = vmul.f32 1.442695, %v934_v39  ;;  %v937_v63 = vsub.f32 0.0, %v4750_v0  ;;  %v4753_v3 = vadd.f32 %v920_v30, %v804_v45 }
 0x147   :  { %4057 = vpow2.f32 %v946_v43  ;;  %v952_v46 = vmul.f32 1.442695, %v937_v63  ;;  %v936_v23 = vsub.f32 0.0, %v4753_v3 }
 0x149   :  { %4059 = vpow2.f32 %v952_v46  ;;  %v950_v32 = vmul.f32 1.442695, %v936_v23 }
 0x14a   :  { %v4048_v27 = vpop.eup %4047 }
 0x14b   :  { %v955_v44 = vadd.f32 1.0, %v4048_v27  ;;  %4061 = vpow2.f32 %v950_v32 }
 0x14c   :  { %v4050_v11 = vpop.eup %4049 }
 0x14d   :  { %4063 = vrcp.f32 %v955_v44  ;;  %v954_v54 = vadd.f32 1.0, %v4050_v11 }
 0x14e   :  { %v4052_v55 = vpop.eup %4051 }
 0x14f   :  { %4065 = vrcp.f32 %v954_v54  ;;  %v957_v21 = vadd.f32 1.0, %v4052_v55 }
 0x151   :  { %v4054_v10 = vpop.eup %4053  ;;  %4067 = vrcp.f32 %v957_v21 }
 0x152   :  { %v4056_v6 = vpop.eup %4055  ;;  %v956_v9 = vadd.f32 1.0, %v4054_v10 }
 0x153   :  { %v959_v36 = vadd.f32 1.0, %v4056_v6 }
 0x154   :  { %v4058_v42 = vpop.eup %4057  ;;  %4069 = vrcp.f32 %v956_v9 }
 0x155   :  { %4071 = vrcp.f32 %v959_v36  ;;  %v958_v49 = vadd.f32 1.0, %v4058_v42 }
 0x156   :  { %v4060_v24 = vpop.eup %4059 }
 0x157   :  { %4073 = vrcp.f32 %v958_v49  ;;  %v961_v14 = vadd.f32 1.0, %v4060_v24 }
 0x158   :  { %v4062_v15 = vpop.eup %4061 }
 0x159   :  { %4075 = vrcp.f32 %v961_v14  ;;  %v960_v56 = vadd.f32 1.0, %v4062_v15 }
 0x15a   :  { %v4064_v50 = vpop.eup %4063 }
 0x15b   :  { %v965_v35 = vmul.f32 %v4064_v50, %v4732_v28  ;;  %4077 = vrcp.f32 %v960_v56 }
 0x15c   :  { %v4066_v61 = vpop.eup %4065 }
 0x15d   :  { %v4757_v29 = vand.u32 4294901760, %v965_v35  ;;  %v963_v38 = vmul.f32 %v4066_v61, %v4735_v18  ;;  %v5679_v61 = vld [vmem:[#allocation17_spill] sm:$0xff] }
 0x15e   :  { %v4068_v48 = vpop.eup %4067 }
 0x15f   :  { %v4761_v4 = vsub.f32 %v965_v35, %v4757_v29  ;;  %v4763_v58 = vand.u32 4294901760, %v963_v38  ;;  %v969_v31 = vmul.f32 %v4068_v48, %v4738_v26  ;;  %v5681_v48 = vld [vmem:[#allocation20_spill] sm:$0xff] }
 0x161   :  { %v4070_v40 = vpop.eup %4069  ;;  %v1087_v12 = vand.u32 4294901760, %v4761_v4  ;;  %v4768_v34 = vsub.f32 %v963_v38, %v4763_v58  ;;  %v4770_v28 = vand.u32 4294901760, %v969_v31  ;;  %3524 = vmatprep.mubr.f32.mxu1 %v4763_v58 }
 0x162   :  { %v4072_v59 = vpop.eup %4071  ;;  %v967_v18 = vmul.f32 %v4070_v40, %v4741_v16  ;;  %3525 = vmatmul.mubr.f32.vlgmr.msra.gmra.mxu1 %v4757_v29  ;;  %v5684_v40 = vld [vmem:[#allocation30_spill] sm:$0xff] }
 0x163   :  { %v4776_v47 = vsub.f32 %v969_v31, %v4770_v28  ;;  %v973_v26 = vmul.f32 %v4072_v59, %v4743_v53  ;;  %3581 = vmatpush3.msra.mxu1 %v4538_v5  ;;  %v1077_v1 = vand.u32 4294901760, %v4768_v34  ;;  %v1088_v16 = vsub.f32 %v4761_v4, %v1087_v12  ;;  %v5682_v31 = vld [vmem:[#allocation27_spill] sm:$0xff]  ;;  %v5685_v59 = vld [vmem:[#allocation24_spill] sm:$0xff] }
 0x164   :  { %v4074_v60 = vpop.eup %4073  ;;  %v4781_v2 = vand.u32 4294901760, %v967_v18  ;;  %3582 = vmatprep.subr.mxu1 %v4543_v13 }
 0x165   :  { %v4787_v30 = vand.u32 4294901760, %v973_v26  ;;  %v971_v41 = vmul.f32 %v4074_v60, %v4747_v20  ;;  %3583 = vmatpush3.msra.mxu1 %v4543_v13  ;;  %v1078_v53 = vsub.f32 %v4768_v34, %v1077_v1  ;;  %v1107_v46 = vand.u32 4294901760, %v4776_v47  ;;  %v5690_v60 = vld [vmem:[#allocation40_spill] sm:$0xff] }
 0x166   :  { %v4076_v39 = vpop.eup %4075  ;;  %v4795_v45 = vsub.f32 %v967_v18, %v4781_v2  ;;  %3527 = vmatprep.mubr.f32.mxu1 %v4781_v2  ;;  %3584 = vmatprep.subr.mxu1 %v4553_v25  ;;  %v1089_v27 = vand.u32 4294901760, %v1088_v16  ;;  %v5686_v18 = vld [vmem:[#allocation34_spill] sm:$0xff]  ;;  %v5691_v16 = vld [vmem:[#allocation33_spill] sm:$0xff] }
 0x167   :  { %v4799_v43 = vand.u32 4294901760, %v971_v41  ;;  %v977_v63 = vmul.f32 %v4076_v39, %v4750_v0  ;;  %3528 = vmatmul.mubr.f32.gmra.mxu1 %v4770_v28  ;;  %v1079_v20 = vand.u32 4294901760, %v1078_v53  ;;  %v4807_v44 = vsub.f32 %v973_v26, %v4787_v30  ;;  %v5687_v26 = vld [vmem:[#allocation28_spill] sm:$0xff]  ;;  %v5694_v39 = vld [vmem:[#allocation39_spill] sm:$0xff] }
 0x168   :  { %v4078_v23 = vpop.eup %4077  ;;  %3585 = vmatpush3.msra.mxu1 %v4553_v25  ;;  %v1097_v32 = vand.u32 4294901760, %v4795_v45  ;;  %v5693_v53 = vld [vmem:[#allocation36_spill] sm:$0xff] }
 0x169   :  { %v4810_v11 = vsub.f32 %v971_v41, %v4799_v43  ;;  %v975_v54 = vmul.f32 %v4078_v23, %v4753_v3  ;;  %3586 = vmatprep.subr.mxu1 %v4565_v22  ;;  %3480 = vmatprep.mubr.f32.mxu0 %v1079_v20  ;;  %v4814_v0 = vand.u32 4294901760, %v977_v63  ;;  %v1108_v3 = vsub.f32 %v4776_v47, %v1107_v46  ;;  %v5692_v41 = vld [vmem:[#allocation42_spill] sm:$0xff]  ;;  %v5710_v20 = vld [vmem:[#allocation41_spill] sm:$0xff] }
 0x16a   :  { %3587 = vmatpush3.msra.mxu1 %v4565_v22  ;;  %3530 = vmatprep.mubr.f32.mxu1 %v4799_v43  ;;  %v1098_v55 = vsub.f32 %v4795_v45, %v1097_v32  ;;  %v1127_v36 = vand.u32 4294901760, %v4807_v44  ;;  %v5712_v23 = vld [vmem:[#allocation46_spill] sm:$0xff] }
 0x16b   :  { %v4821_v21 = vand.u32 4294901760, %v975_v54  ;;  %3588 = vmatprep.subr.mxu1 %v4578_v37  ;;  %3481 = vmatmul.mubr.f32.vlgmr.msra.gmra.mxu0 %v1089_v27  ;;  %v1117_v10 = vand.u32 4294901760, %v4810_v11  ;;  %v4837_v42 = vsub.f32 %v977_v63, %v4814_v0  ;;  %v1109_v49 = vand.u32 4294901760, %v1108_v3  ;;  %v5695_v63 = vld [vmem:[#allocation43_spill] sm:$0xff] }
 0x16c   :  { %3531 = vmatmul.mubr.f32.gmra.mxu1 %v4787_v30  ;;  %3537 = vmatpush3.msra.mxu0 %v4541_v8  ;;  %v1099_v6 = vand.u32 4294901760, %v1098_v55  ;;  %v1998_v27 = vld [vmem:[#allocation7 + $0x70] sm:$0xff] }
 0x16d   :  { %v4831_v9 = vsub.f32 %v975_v54, %v4821_v21  ;;  %3589 = vmatpush3.msra.mxu1 %v4578_v37  ;;  %3538 = vmatprep.subr.mxu0 %v4551_v19  ;;  %v1118_v8 = vsub.f32 %v4810_v11, %v1117_v10  ;;  %v1147_v15 = vand.u32 4294901760, %v4837_v42  ;;  %v1996_v54 = vld [vmem:[#allocation7 + $0x60] sm:$0xff] }
 0x16e   :  { %3590 = vmatprep.subr.mxu1 %v4586_v51  ;;  %3539 = vmatpush3.msra.mxu0 %v4551_v19  ;;  %v1128_v19 = vsub.f32 %v4807_v44, %v1127_v36  ;;  %v5037_v3 = vand.u32 4294901760, %v1996_v54 }
 0x16f   :  { %3591 = vmatpush3.msra.mxu1 %v4586_v51  ;;  %3483 = vmatprep.mubr.f32.mxu0 %v1099_v6  ;;  %v1137_v24 = vand.u32 4294901760, %v4831_v9  ;;  %v1119_v14 = vand.u32 4294901760, %v1118_v8  ;;  %v1148_v50 = vsub.f32 %v4837_v42, %v1147_v15 }
 0x170   :  { %3533 = vmatprep.mubr.f32.mxu1 %v4821_v21  ;;  %3540 = vmatprep.subr.mxu0 %v4563_v17 }
 0x171   :  { %3592 = vmatprep.subr.mxu1 %v4597_v57  ;;  %3484 = vmatmul.mubr.f32.gmra.mxu0 %v1109_v49  ;;  %v1138_v56 = vsub.f32 %v4831_v9, %v1137_v24  ;;  %v1149_v38 = vand.u32 4294901760, %v1148_v50  ;;  %v1994_v49 = vld [vmem:[#allocation7 + $0x50] sm:$0xff] }
 0x172   :  { %3534 = vmatmul.mubr.f32.gmra.mxu1 %v4814_v0  ;;  %3541 = vmatpush3.msra.mxu0 %v4563_v17  ;;  %v1129_v17 = vand.u32 4294901760, %v1128_v19 }
 0x173   :  { %3593 = vmatpush3.msra.mxu1 %v4597_v57  ;;  %3542 = vmatprep.subr.mxu0 %v4575_v33  ;;  %v1139_v35 = vand.u32 4294901760, %v1138_v56 }
 0x174   :  { %3594 = vmatprep.subr.mxu1 %v4610_v62  ;;  %3612 = vmatprep.mubr.f32.mxu1 %v1077_v1  ;;  %v5688_v1 = vld [vmem:[#allocation37_spill] sm:$0xff] }
 0x175   :  { %3543 = vmatpush3.msra.mxu0 %v4575_v33  ;;  %3595 = vmatpush3.msra.mxu1 %v4610_v62  ;;  %v5680_v33 = vld [vmem:[#allocation25_spill] sm:$0xff] }
 0x176   :  { %3486 = vmatprep.mubr.f32.mxu0 %v1119_v14  ;;  %3544 = vmatprep.subr.mxu0 %v4589_v52 }
 0x177   :  { %3596 = vmatprep.subr.mxu1 %v4624_v7  ;;  %3487 = vmatmul.mubr.f32.gmra.mxu0 %v1129_v17  ;;  %v1993_v17 = vld [vmem:[#allocation7 + $0x48] sm:$0xff] }
 0x178   :  { %3545 = vmatpush3.msra.mxu0 %v4589_v52  ;;  %3597 = vmatpush3.msra.mxu1 %v4624_v7  ;;  %v5683_v52 = vld [vmem:[#allocation22_spill] sm:$0xff] }
 0x179   :  { %3546 = vmatprep.subr.mxu0 %v5679_v61  ;;  %3598 = vmatprep.subr.mxu1 %v5680_v33 }
 0x17a   :  { %3547 = vmatpush3.msra.mxu0 %v5679_v61  ;;  %3599 = vmatpush3.msra.mxu1 %v5680_v33 }
 0x17b   :  { %3489 = vmatprep.mubr.f32.mxu0 %v1139_v35  ;;  %3548 = vmatprep.subr.mxu0 %v5681_v48 }
 0x17c   :  { %3600 = vmatprep.subr.mxu1 %v5682_v31  ;;  %3490 = vmatmul.mubr.f32.gmra.mxu0 %v1149_v38 }
 0x17d   :  { %3549 = vmatpush3.msra.mxu0 %v5681_v48  ;;  %3601 = vmatpush3.msra.mxu1 %v5682_v31  ;;  %v1992_v48 = vld [vmem:[#allocation7 + $0x40] sm:$0xff] }
 0x17e   :  { %3550 = vmatprep.subr.mxu0 %v5683_v52  ;;  %3568 = vmatprep.mubr.f32.mxu0 %v4768_v34  ;;  %v5689_v34 = vld [vmem:[#allocation29_spill] sm:$0xff] }
 0x17f   :  { %3602 = vmatprep.subr.mxu1 %v5684_v40  ;;  %3551 = vmatpush3.msra.mxu0 %v5683_v52 }
 0x180   :  { %3603 = vmatpush3.msra.mxu1 %v5684_v40  ;;  %3552 = vmatprep.subr.mxu0 %v5685_v59 }
 0x181   :  { %3604 = vmatprep.subr.mxu1 %v5686_v18  ;;  %3553 = vmatpush3.msra.mxu0 %v5685_v59  ;;  %v5082_v59 = vand.u32 4294901760, %v1992_v48 }
 0x182   :  { %3605 = vmatpush3.msra.mxu1 %v5686_v18  ;;  %3554 = vmatprep.subr.mxu0 %v5687_v26 }
 0x183   :  { %3606 = vmatprep.subr.mxu1 %v5688_v1  ;;  %3555 = vmatpush3.msra.mxu0 %v5687_v26  ;;  %v1991_v26 = vld [vmem:[#allocation7 + $0x38] sm:$0xff] }
 0x184   :  { %3607 = vmatpush3.msra.mxu1 %v5688_v1  ;;  %3556 = vmatprep.subr.mxu0 %v5689_v34 }
 0x185   :  { %3608 = vmatprep.subr.mxu1 %v5690_v60  ;;  %3557 = vmatpush3.msra.mxu0 %v5689_v34 }
 0x186   :  { %3609 = vmatpush3.msra.mxu1 %v5690_v60  ;;  %3558 = vmatprep.subr.mxu0 %v5691_v16 }
 0x187   :  { %3610 = vmatprep.subr.mxu1 %v5692_v41  ;;  %3559 = vmatpush3.msra.mxu0 %v5691_v16  ;;  %v5096_v16 = vand.u32 4294901760, %v1991_v26 }
 0x188   :  { %3611 = vmatpush3.msra.mxu1 %v5692_v41  ;;  %3560 = vmatprep.subr.mxu0 %v5693_v53 }
 0x189   :  { %3613 = vmatmul.mubr.f32.vlgmr.msra.gmra.mxu1 %v1087_v12  ;;  %3668 = vmatprep.subr.mxu1 %v4538_v5  ;;  %v5706_v12 = vld [vmem:[#allocation31_spill] sm:$0xff] }
 0x18a   :  { %3561 = vmatpush3.msra.mxu0 %v5693_v53  ;;  %3615 = vmatprep.mubr.f32.mxu1 %v1097_v32  ;;  %v1999_v32 = vld [vmem:[#allocation7 + $0x78] sm:$0xff]  ;;  %v1990_v53 = vld [vmem:[#allocation7 + $0x30] sm:$0xff] }
 0x18b   :  { %3669 = vmatpush3.msra.mxu1 %v4538_v5  ;;  %3562 = vmatprep.subr.mxu0 %v5694_v39  ;;  %v5696_v5 = vld [vmem:[#allocation44_spill] sm:$0xff] }
 0x18c   :  { %3670 = vmatprep.subr.mxu1 %v4543_v13  ;;  %3563 = vmatpush3.msra.mxu0 %v5694_v39 }
 0x18d   :  { %3671 = vmatpush3.msra.mxu1 %v4543_v13  ;;  %3564 = vmatprep.subr.mxu0 %v5695_v63  ;;  %v5697_v13 = vld [vmem:[#allocation13_spill] sm:$0xff] }
 0x18e   :  { %3616 = vmatmul.mubr.f32.gmra.mxu1 %v1107_v46  ;;  %3672 = vmatprep.subr.mxu1 %v4553_v25  ;;  %v5711_v46 = vld [vmem:[#allocation45_spill] sm:$0xff] }
 0x18f   :  { %3565 = vmatpush3.msra.mxu0 %v5695_v63  ;;  %3618 = vmatprep.mubr.f32.mxu1 %v1117_v10  ;;  %v1995_v10 = vld [vmem:[#allocation7 + $0x58] sm:$0xff] }
 0x190   :  { %3673 = vmatpush3.msra.mxu1 %v4553_v25  ;;  %3566 = vmatprep.subr.mxu0 %v5696_v5  ;;  %v5698_v25 = vld [vmem:[#allocation14_spill] sm:$0xff]  ;;  %v5050_v8 = vand.u32 4294901760, %v1995_v10 }
 0x191   :  { %3674 = vmatprep.subr.mxu1 %v4565_v22  ;;  %3567 = vmatpush3.msra.mxu0 %v5696_v5 }
 0x192   :  { %3675 = vmatpush3.msra.mxu1 %v4565_v22  ;;  %3569 = vmatmul.mubr.f32.vlgmr.msra.gmra.mxu0 %v4761_v4  ;;  %v5699_v22 = vld [vmem:[#allocation15_spill] sm:$0xff]  ;;  %v5705_v4 = vld [vmem:[#allocation26_spill] sm:$0xff]  ;;  %v5061_v56 = vsub.f32 %v1995_v10, %v5050_v8 }
 0x193   :  { %3619 = vmatmul.mubr.f32.gmra.mxu1 %v1127_v36  ;;  %3624 = vmatprep.subr.mxu0 %v5697_v13 }
 0x194   :  { %3676 = vmatprep.subr.mxu1 %v4578_v37  ;;  %3571 = vmatprep.mubr.f32.mxu0 %v4795_v45  ;;  %v5709_v45 = vld [vmem:[#allocation38_spill] sm:$0xff]  ;;  %v5073_v38 = vand.u32 4294901760, %v5061_v56 }
 0x195   :  { %3621 = vmatprep.mubr.f32.mxu1 %v1137_v24  ;;  %3625 = vmatpush3.msra.mxu0 %v5697_v13  ;;  %v5106_v13 = vsub.f32 %v1991_v26, %v5096_v16 }
 0x196   :  { %3677 = vmatpush3.msra.mxu1 %v4578_v37  ;;  %3626 = vmatprep.subr.mxu0 %v5698_v25  ;;  %v5700_v37 = vld [vmem:[#allocation16_spill] sm:$0xff]  ;;  %5718 = vst [vmem:[#allocation30_spill] sm:$0xff] %v5073_v38 }
 0x197   :  { %3678 = vmatprep.subr.mxu1 %v4586_v51  ;;  %3627 = vmatpush3.msra.mxu0 %v5698_v25  ;;  %5724 = vst [vmem:[#allocation40_spill] sm:$0xff] %v5106_v13  ;;  %v5109_v25 = vand.u32 4294901760, %v1990_v53 }
 0x198   :  { %3679 = vmatpush3.msra.mxu1 %v4586_v51  ;;  %3572 = vmatmul.mubr.f32.gmra.mxu0 %v4776_v47  ;;  %v5701_v51 = vld [vmem:[#allocation18_spill] sm:$0xff]  ;;  %v5708_v47 = vld [vmem:[#allocation35_spill] sm:$0xff] }
 0x199   :  { %3622 = vmatmul.mubr.f32.gmra.mxu1 %v1147_v15  ;;  %3628 = vmatprep.subr.mxu0 %v5699_v22  ;;  %v5058_v15 = vand.u32 4294901760, %v1994_v49  ;;  %5725 = vst [vmem:[#allocation33_spill] sm:$0xff] %v5109_v25 }
 0x19a   :  { %3680 = vmatprep.subr.mxu1 %v4597_v57  ;;  %3574 = vmatprep.mubr.f32.mxu0 %v4810_v11 }
 0x19b   :  { %3629 = vmatpush3.msra.mxu0 %v5699_v22  ;;  %3681 = vmatpush3.msra.mxu1 %v4597_v57  ;;  %v5702_v57 = vld [vmem:[#allocation19_spill] sm:$0xff]  ;;  %v5067_v61 = vsub.f32 %v1994_v49, %v5058_v15  ;;  %v1989_v22 = vld [vmem:[#allocation7 + $0x28] sm:$0xff] }
 0x19c   :  { %3700 = vmatprep.mubr.f32.mxu1 %v4763_v58  ;;  %3630 = vmatprep.subr.mxu0 %v5700_v37 }
 0x19d   :  { %3682 = vmatprep.subr.mxu1 %v4610_v62  ;;  %3631 = vmatpush3.msra.mxu0 %v5700_v37  ;;  %5717 = vst [vmem:[#allocation22_spill] sm:$0xff] %v5067_v61  ;;  %v5077_v52 = vand.u32 4294901760, %v5067_v61 }
 0x19e   :  { %3683 = vmatpush3.msra.mxu1 %v4610_v62  ;;  %3575 = vmatmul.mubr.f32.gmra.mxu0 %v4807_v44  ;;  %v5703_v62 = vld [vmem:[#allocation21_spill] sm:$0xff]  ;;  %v5015_v44 = vand.u32 4294901760, %v1998_v27 }
 0x19f   :  { %3632 = vmatprep.subr.mxu0 %v5701_v51  ;;  %3684 = vmatprep.subr.mxu1 %v4624_v7  ;;  %5719 = vst [vmem:[#allocation24_spill] sm:$0xff] %v5077_v52 }
 0x1a0   :  { %3577 = vmatprep.mubr.f32.mxu0 %v4831_v9  ;;  %3633 = vmatpush3.msra.mxu0 %v5701_v51 }
 0x1a1   :  { %3685 = vmatpush3.msra.mxu1 %v4624_v7  ;;  %3634 = vmatprep.subr.mxu0 %v5702_v57  ;;  %v5704_v7 = vld [vmem:[#allocation23_spill] sm:$0xff] }
 0x1a2   :  { %3686 = vmatprep.subr.mxu1 %v5680_v33  ;;  %3635 = vmatpush3.msra.mxu0 %v5702_v57  ;;  %v5115_v57 = vand.u32 4294901760, %v5106_v13 }
 0x1a3   :  { %3687 = vmatpush3.msra.mxu1 %v5680_v33  ;;  %3578 = vmatmul.mubr.f32.gmra.mxu0 %v4837_v42  ;;  %v5047_v42 = vsub.f32 %v1996_v54, %v5037_v3  ;;  %v5069_v33 = vand.u32 4294901760, %v1993_v17 }
 0x1a4   :  { %3636 = vmatprep.subr.mxu0 %v5703_v62  ;;  %3688 = vmatprep.subr.mxu1 %v5682_v31  ;;  %5726 = vst [vmem:[#allocation42_spill] sm:$0xff] %v5115_v57 }
 0x1a5   :  { %3637 = vmatpush3.msra.mxu0 %v5703_v62  ;;  %3656 = vmatprep.mubr.f32.mxu0 %v4763_v58  ;;  %v5707_v58 = vld [vmem:[#allocation32_spill] sm:$0xff]  ;;  %v5056_v14 = vand.u32 4294901760, %v5047_v42  ;;  %v5117_v62 = vand.u32 4294901760, %v1989_v22 }
 0x1a6   :  { %3689 = vmatpush3.msra.mxu1 %v5682_v31  ;;  %3638 = vmatprep.subr.mxu0 %v5704_v7 }
 0x1a7   :  { %3690 = vmatprep.subr.mxu1 %v5684_v40  ;;  %3639 = vmatpush3.msra.mxu0 %v5704_v7  ;;  %5716 = vst [vmem:[#allocation27_spill] sm:$0xff] %v5056_v14  ;;  %v2186_v35 = vsub.f32 %v5047_v42, %v5056_v14  ;;  %5727 = vst [vmem:[#allocation36_spill] sm:$0xff] %v5117_v62  ;;  %v5121_v7 = vsub.f32 %v1990_v53, %v5109_v25 }
 0x1a8   :  { %3691 = vmatpush3.msra.mxu1 %v5684_v40  ;;  %3640 = vmatprep.subr.mxu0 %v5705_v4  ;;  %v5080_v40 = vsub.f32 %v1993_v17, %v5069_v33 }
 0x1a9   :  { %3692 = vmatprep.subr.mxu1 %v5686_v18  ;;  %3641 = vmatpush3.msra.mxu0 %v5705_v4  ;;  %v2187_v31 = vand.u32 4294901760, %v2186_v35  ;;  %5728 = vst [vmem:[#allocation39_spill] sm:$0xff] %v5121_v7  ;;  %v1988_v4 = vld [vmem:[#allocation7 + $0x20] sm:$0xff] }
 0x1aa   :  { %3693 = vmatpush3.msra.mxu1 %v5686_v18  ;;  %3642 = vmatprep.subr.mxu0 %v5706_v12  ;;  %5720 = vst [vmem:[#allocation34_spill] sm:$0xff] %v5080_v40  ;;  %v2193_v18 = vsub.f32 %v5061_v56, %v5073_v38  ;;  %v5091_v34 = vand.u32 4294901760, %v5080_v40 }
 0x1ab   :  { %3694 = vmatprep.subr.mxu1 %v5688_v1  ;;  %3643 = vmatpush3.msra.mxu0 %v5706_v12 }
 0x1ac   :  { %3695 = vmatpush3.msra.mxu1 %v5688_v1  ;;  %3644 = vmatprep.subr.mxu0 %v5707_v58  ;;  %v2200_v1 = vsub.f32 %v5067_v61, %v5077_v52  ;;  %5721 = vst [vmem:[#allocation28_spill] sm:$0xff] %v5091_v34  ;;  %v2207_v63 = vsub.f32 %v5080_v40, %v5091_v34 }
 0x1ad   :  { %3696 = vmatprep.subr.mxu1 %v5690_v60  ;;  %3645 = vmatpush3.msra.mxu0 %v5707_v58  ;;  %v2221_v58 = vsub.f32 %v5106_v13, %v5115_v57 }
 0x1ae   :  { %3697 = vmatpush3.msra.mxu1 %v5690_v60  ;;  %3646 = vmatprep.subr.mxu0 %v5708_v47  ;;  %v5094_v60 = vsub.f32 %v1992_v48, %v5082_v59  ;;  %v2201_v39 = vand.u32 4294901760, %v2200_v1  ;;  %v2208_v37 = vand.u32 4294901760, %v2207_v63 }
 0x1af   :  { %3698 = vmatprep.subr.mxu1 %v5692_v41  ;;  %3647 = vmatpush3.msra.mxu0 %v5708_v47  ;;  %v5127_v47 = vsub.f32 %v1989_v22, %v5117_v62 }
 0x1b0   :  { %3699 = vmatpush3.msra.mxu1 %v5692_v41  ;;  %3648 = vmatprep.subr.mxu0 %v5709_v45  ;;  %5722 = vst [vmem:[#allocation37_spill] sm:$0xff] %v5094_v60  ;;  %v2194_v41 = vand.u32 4294901760, %v2193_v18  ;;  %v5103_v5 = vand.u32 4294901760, %v5094_v60  ;;  %v1984_v18 = vld [vmem:[#allocation7] sm:$0xff] }
 0x1b1   :  { %3701 = vmatmul.mubr.f32.vlgmr.msra.gmra.mxu1 %v4757_v29  ;;  %3649 = vmatpush3.msra.mxu0 %v5709_v45  ;;  %5729 = vst [vmem:[#allocation43_spill] sm:$0xff] %v5127_v47  ;;  %v5129_v45 = vand.u32 4294901760, %v1988_v4  ;;  %v5177_v53 = vand.u32 4294901760, %v1984_v18 }
 0x1b2   :  { %3703 = vmatprep.mubr.f32.mxu1 %v4781_v2  ;;  %3650 = vmatprep.subr.mxu0 %v5710_v20  ;;  %5723 = vst [vmem:[#allocation29_spill] sm:$0xff] %v5103_v5  ;;  %v2214_v51 = vsub.f32 %v5094_v60, %v5103_v5 }
 0x1b3   :  { %3651 = vmatpush3.msra.mxu0 %v5710_v20  ;;  %5730 = vst [vmem:[#allocation44_spill] sm:$0xff] %v5129_v45  ;;  %v5133_v20 = vand.u32 4294901760, %v5121_v7  ;;  %5742 = vst [vmem:[#allocation35_spill] sm:$0xff] %v5177_v53 }
 0x1b4   :  { %3652 = vmatprep.subr.mxu0 %v5711_v46  ;;  %v2215_v12 = vand.u32 4294901760, %v2214_v51 }
 0x1b5   :  { %3704 = vmatmul.mubr.f32.gmra.mxu1 %v4770_v28  ;;  %3653 = vmatpush3.msra.mxu0 %v5711_v46  ;;  %5731 = vst [vmem:[#allocation13_spill] sm:$0xff] %v5133_v20  ;;  %v1987_v46 = vld [vmem:[#allocation7 + $0x18] sm:$0xff]  ;;  %v2228_v54 = vsub.f32 %v5121_v7, %v5133_v20 }
 0x1b6   :  { %3706 = vmatprep.mubr.f32.mxu1 %v4799_v43  ;;  %3654 = vmatprep.subr.mxu0 %v5712_v23 }
 0x1b7   :  { %3655 = vmatpush3.msra.mxu0 %v5712_v23  ;;  %v2222_v23 = vand.u32 4294901760, %v2221_v58 }
 0x1b8   :  { %3657 = vmatmul.mubr.f32.vlgmr.msra.gmra.mxu0 %v4757_v29  ;;  %v5010_v29 = vand.u32 4294901760, %v1999_v32 }
 0x1b9   :  { %3707 = vmatmul.mubr.f32.gmra.mxu1 %v4787_v30  ;;  %3659 = vmatprep.mubr.f32.mxu0 %v4781_v2 }
 0x1ba   :  { %3709 = vmatprep.mubr.f32.mxu1 %v4821_v21  ;;  %v5013_v2 = vsub.f32 %v1999_v32, %v5010_v29  ;;  %3712 = vmatprep.subr.mxu0 %v5010_v29  ;;  %v5137_v32 = vand.u32 4294901760, %v5127_v47 }
 0x1bb   :  { %3713 = vmatpush3.msra.mxu0 %v5010_v29 }
 0x1bc   :  { %3660 = vmatmul.mubr.f32.gmra.mxu0 %v4770_v28  ;;  %v1997_v28 = vld [vmem:[#allocation7 + $0x68] sm:$0xff]  ;;  %3714 = vmatprep.subr.mxu0 %v5015_v44  ;;  %5732 = vst [vmem:[#allocation14_spill] sm:$0xff] %v5137_v32  ;;  %v2235_v10 = vsub.f32 %v5127_v47, %v5137_v32 }
 0x1bd   :  { %3710 = vmatmul.mubr.f32.gmra.mxu1 %v4814_v0  ;;  %3662 = vmatprep.mubr.f32.mxu0 %v4799_v43  ;;  %v5023_v43 = vsub.f32 %v1998_v27, %v5015_v44  ;;  %v5025_v11 = vand.u32 4294901760, %v1997_v28  ;;  %v5140_v27 = vsub.f32 %v1988_v4, %v5129_v45 }
 0x1be   :  { %3715 = vmatpush3.msra.mxu0 %v5015_v44  ;;  %v2236_v17 = vand.u32 4294901760, %v2235_v10 }
 0x1bf   :  { %v5032_v55 = vand.u32 4294901760, %v5023_v43  ;;  %3716 = vmatprep.subr.mxu0 %v5025_v11  ;;  %5733 = vst [vmem:[#allocation15_spill] sm:$0xff] %v5140_v27 }
 0x1c0   :  { %3663 = vmatmul.mubr.f32.gmra.mxu0 %v4787_v30  ;;  %v5020_v30 = vand.u32 4294901760, %v5013_v2 }
 0x1c1   :  { %3665 = vmatprep.mubr.f32.mxu0 %v4821_v21  ;;  %5714 = vst [vmem:[#allocation25_spill] sm:$0xff] %v5032_v55  ;;  %v5035_v21 = vsub.f32 %v1997_v28, %v5025_v11  ;;  %3717 = vmatpush3.msra.mxu0 %v5025_v11  ;;  %v2172_v9 = vsub.f32 %v5023_v43, %v5032_v55  ;;  %v5142_v28 = vand.u32 4294901760, %v1987_v46 }
 0x1c2   :  { %5713 = vst [vmem:[#allocation17_spill] sm:$0xff] %v5020_v30  ;;  %3718 = vmatprep.subr.mxu0 %v5037_v3 }
 0x1c3   :  { %v5044_v36 = vand.u32 4294901760, %v5035_v21  ;;  %3719 = vmatpush3.msra.mxu0 %v5037_v3  ;;  %v2173_v24 = vand.u32 4294901760, %v2172_v9  ;;  %5734 = vst [vmem:[#allocation16_spill] sm:$0xff] %v5142_v28  ;;  %v5154_v9 = vsub.f32 %v1987_v46, %v5142_v28 }
 0x1c4   :  { %3666 = vmatmul.mubr.f32.gmra.mxu0 %v4814_v0  ;;  %v2165_v0 = vsub.f32 %v5013_v2, %v5020_v30  ;;  %3720 = vmatprep.subr.mxu0 %v5050_v8 }
 0x1c5   :  { %5715 = vst [vmem:[#allocation20_spill] sm:$0xff] %v5044_v36  ;;  %v2179_v19 = vsub.f32 %v5035_v21, %v5044_v36  ;;  %3721 = vmatpush3.msra.mxu0 %v5050_v8  ;;  %5736 = vst [vmem:[#allocation19_spill] sm:$0xff] %v5154_v9  ;;  %v5163_v35 = vand.u32 4294901760, %v5154_v9 }
 0x1c6   :  { %v2166_v6 = vand.u32 4294901760, %v2165_v0  ;;  %3722 = vmatprep.subr.mxu0 %v5058_v15  ;;  %v1986_v0 = vld [vmem:[#allocation7 + $0x10] sm:$0xff] }
 0x1c7   :  { %v2180_v50 = vand.u32 4294901760, %v2179_v19  ;;  %3723 = vmatpush3.msra.mxu0 %v5058_v15  ;;  %v5156_v49 = vand.u32 4294901760, %v1986_v0  ;;  %v1985_v19 = vld [vmem:[#allocation7 + $0x8] sm:$0xff]  ;;  %5738 = vst [vmem:[#allocation23_spill] sm:$0xff] %v5163_v35  ;;  %v2249_v1 = vsub.f32 %v5154_v9, %v5163_v35 }
 0x1c8   :  { %3756 = vmatprep.subr.mxu1 %v2166_v6  ;;  %3724 = vmatprep.subr.mxu0 %v5069_v33 }
 0x1c9   :  { %3757 = vmatpush3.msra.mxu1 %v2166_v6  ;;  %3725 = vmatpush3.msra.mxu0 %v5069_v33  ;;  %v5151_v6 = vand.u32 4294901760, %v5140_v27  ;;  %5737 = vst [vmem:[#allocation21_spill] sm:$0xff] %v5156_v49  ;;  %v5166_v48 = vsub.f32 %v1986_v0, %v5156_v49  ;;  %v2250_v63 = vand.u32 4294901760, %v2249_v1 }
 0x1ca   :  { %3758 = vmatprep.subr.mxu1 %v2173_v24  ;;  %3726 = vmatprep.subr.mxu0 %v5082_v59 }
 0x1cb   :  { %3759 = vmatpush3.msra.mxu1 %v2173_v24  ;;  %3727 = vmatpush3.msra.mxu0 %v5082_v59  ;;  %5735 = vst [vmem:[#allocation18_spill] sm:$0xff] %v5151_v6  ;;  %v2229_v24 = vand.u32 4294901760, %v2228_v54  ;;  %5739 = vst [vmem:[#allocation26_spill] sm:$0xff] %v5166_v48 }
 0x1cc   :  { %3760 = vmatprep.subr.mxu1 %v2180_v50  ;;  %3728 = vmatprep.subr.mxu0 %v5096_v16 }
 0x1cd   :  { %3761 = vmatpush3.msra.mxu1 %v2180_v50  ;;  %3729 = vmatpush3.msra.mxu0 %v5096_v16  ;;  %v2242_v50 = vsub.f32 %v5140_v27, %v5151_v6 }
 0x1ce   :  { %3762 = vmatprep.subr.mxu1 %v2187_v31  ;;  %3730 = vmatprep.subr.mxu0 %v5109_v25 }
 0x1cf   :  { %3763 = vmatpush3.msra.mxu1 %v2187_v31  ;;  %3731 = vmatpush3.msra.mxu0 %v5109_v25  ;;  %v5169_v31 = vand.u32 4294901760, %v1985_v19  ;;  %v2243_v26 = vand.u32 4294901760, %v2242_v50 }
 0x1d0   :  { %3764 = vmatprep.subr.mxu1 %v2194_v41  ;;  %3732 = vmatprep.subr.mxu0 %v5117_v62 }
 0x1d1   :  { %3765 = vmatpush3.msra.mxu1 %v2194_v41  ;;  %3733 = vmatpush3.msra.mxu0 %v5117_v62  ;;  %5740 = vst [vmem:[#allocation31_spill] sm:$0xff] %v5169_v31  ;;  %v5175_v41 = vand.u32 4294901760, %v5166_v48 }
 0x1d2   :  { %3766 = vmatprep.subr.mxu1 %v2201_v39  ;;  %3734 = vmatprep.subr.mxu0 %v5129_v45 }
 0x1d3   :  { %3767 = vmatpush3.msra.mxu1 %v2201_v39  ;;  %3735 = vmatpush3.msra.mxu0 %v5129_v45  ;;  %5741 = vst [vmem:[#allocation32_spill] sm:$0xff] %v5175_v41  ;;  %v5181_v39 = vsub.f32 %v1985_v19, %v5169_v31  ;;  %v2256_v22 = vsub.f32 %v5166_v48, %v5175_v41 }
 0x1d4   :  { %3768 = vmatprep.subr.mxu1 %v2208_v37  ;;  %3736 = vmatprep.subr.mxu0 %v5142_v28 }
 0x1d5   :  { %3769 = vmatpush3.msra.mxu1 %v2208_v37  ;;  %3737 = vmatpush3.msra.mxu0 %v5142_v28  ;;  %5743 = vst [vmem:[#allocation38_spill] sm:$0xff] %v5181_v39  ;;  %v5187_v37 = vsub.f32 %v1984_v18, %v5177_v53  ;;  %v5191_v51 = vand.u32 4294901760, %v5181_v39  ;;  %v2257_v4 = vand.u32 4294901760, %v2256_v22 }
 0x1d6   :  { %3770 = vmatprep.subr.mxu1 %v2215_v12  ;;  %3738 = vmatprep.subr.mxu0 %v5156_v49 }
 0x1d7   :  { %3771 = vmatpush3.msra.mxu1 %v2215_v12  ;;  %3739 = vmatpush3.msra.mxu0 %v5156_v49  ;;  %5744 = vst [vmem:[#allocation41_spill] sm:$0xff] %v5187_v37  ;;  %5745 = vst [vmem:[#allocation45_spill] sm:$0xff] %v5191_v51  ;;  %v5195_v12 = vand.u32 4294901760, %v5187_v37  ;;  %v2263_v58 = vsub.f32 %v5181_v39, %v5191_v51 }
 0x1d8   :  { %3772 = vmatprep.subr.mxu1 %v2222_v23  ;;  %3740 = vmatprep.subr.mxu0 %v5169_v31 }
 0x1d9   :  { %3773 = vmatpush3.msra.mxu1 %v2222_v23  ;;  %3741 = vmatpush3.msra.mxu0 %v5169_v31  ;;  %5746 = vst [vmem:[#allocation46_spill] sm:$0xff] %v5195_v12  ;;  %v2270_v46 = vsub.f32 %v5187_v37, %v5195_v12  ;;  %v2264_v23 = vand.u32 4294901760, %v2263_v58 }
 0x1da   :  { %3774 = vmatprep.subr.mxu1 %v2229_v24  ;;  %3742 = vmatprep.subr.mxu0 %v5177_v53 }
 0x1db   :  { %3775 = vmatpush3.msra.mxu1 %v2229_v24  ;;  %3743 = vmatpush3.msra.mxu0 %v5177_v53  ;;  %v2271_v54 = vand.u32 4294901760, %v2270_v46 }
 0x1dc   :  { %3776 = vmatprep.subr.mxu1 %v2236_v17  ;;  %3800 = vmatprep.subr.mxu0 %v5013_v2 }
 0x1dd   :  { %3777 = vmatpush3.msra.mxu1 %v2236_v17 }
 0x1de   :  { %3778 = vmatprep.subr.mxu1 %v2243_v26 }
 0x1df   :  { %3779 = vmatpush3.msra.mxu1 %v2243_v26 }
 0x1e0   :  { %3780 = vmatprep.subr.mxu1 %v2250_v63 }
 0x1e1   :  { %3781 = vmatpush3.msra.mxu1 %v2250_v63 }
 0x1e2   :  { %3782 = vmatprep.subr.mxu1 %v2257_v4 }
 0x1e3   :  { %3783 = vmatpush3.msra.mxu1 %v2257_v4 }
 0x1e4   :  { %3784 = vmatprep.subr.mxu1 %v2264_v23 }
 0x1e5   :  { %3785 = vmatpush3.msra.mxu1 %v2264_v23 }
 0x1e6   :  { %3786 = vmatprep.subr.mxu1 %v2271_v54 }
 0x1e7   :  { %3787 = vmatpush3.msra.mxu1 %v2271_v54 }
 0x1e8   :  { %3844 = vmatprep.subr.mxu1 %v5010_v29 }
 0x222   :  { %v3526_v0 = vpop.f32.mrf.mxu1 }
 0x224   :  { %v1302_v10 = vpop.f32.mrf.mxu1 }
 0x227   :  { %v3529_v19 = vpop.f32.mrf.mxu1 }
 0x229   :  { %v1314_v50 = vpop.f32.mrf.mxu1 }
 0x22b   :  { %v3482_v24 = vpop.f32.mrf.mxu0 }
 0x22c   :  { %v3532_v26 = vpop.f32.mrf.mxu1  ;;  %v1309_v55 = vadd.f32 %v3526_v0, %v3482_v24 }
 0x22d   :  { %v1081_v17 = vpop.f32.mrf.mxu0 }
 0x22e   :  { %v1326_v63 = vpop.f32.mrf.mxu1  ;;  %v1303_v39 = vadd.f32 %v1302_v10, %v1081_v17 }
 0x231   :  { %v3485_v18 = vpop.f32.mrf.mxu0 }
 0x232   :  { %v3535_v58 = vpop.f32.mrf.mxu1  ;;  %v1321_v53 = vadd.f32 %v3529_v19, %v3485_v18 }
 0x233   :  { %v1101_v1 = vpop.f32.mrf.mxu0 }
 0x234   :  { %v1338_v46 = vpop.f32.mrf.mxu1  ;;  %v1315_v49 = vadd.f32 %v1314_v50, %v1101_v1 }
 0x237   :  { %v3488_v22 = vpop.f32.mrf.mxu0 }
 0x238   :  { %v1333_v61 = vadd.f32 %v3532_v26, %v3488_v22 }
 0x239   :  { %v1121_v4 = vpop.f32.mrf.mxu0 }
 0x23a   :  { %v1327_v25 = vadd.f32 %v1326_v63, %v1121_v4 }
 0x23c   :  { %v3491_v23 = vpop.f32.mrf.mxu0 }
 0x23e   :  { %v1141_v54 = vpop.f32.mrf.mxu0 }
 0x249   :  { %v3614_v12 = vpop.f32.mrf.mxu1 }
 0x24b   :  { %v1586_v51 = vpop.f32.mrf.mxu1 }
 0x24e   :  { %v3617_v35 = vpop.f32.mrf.mxu1 }
 0x250   :  { %v1602_v32 = vpop.f32.mrf.mxu1 }
 0x252   :  { %v3570_v41 = vpop.f32.mrf.mxu0 }
 0x253   :  { %v3620_v57 = vpop.f32.mrf.mxu1  ;;  %v1456_v48 = vadd.f32 %v3570_v41, %v1309_v55  ;;  %v1345_v41 = vadd.f32 %v3535_v58, %v3491_v23 }
 0x254   :  { %v1448_v6 = vpop.f32.mrf.mxu0 }
 0x255   :  { %v1618_v34 = vpop.f32.mrf.mxu1  ;;  %v1449_v27 = vadd.f32 %v1448_v6, %v1303_v39  ;;  %v1595_v28 = vadd.f32 %v3614_v12, %v1456_v48 }
 0x257   :  { %v1587_v40 = vadd.f32 %v1586_v51, %v1449_v27 }
 0x258   :  { %v3573_v20 = vpop.f32.mrf.mxu0 }
 0x259   :  { %v3623_v38 = vpop.f32.mrf.mxu1  ;;  %v1470_v7 = vadd.f32 %v3573_v20, %v1321_v53 }
 0x25a   :  { %v1462_v5 = vpop.f32.mrf.mxu0 }
 0x25b   :  { %v1634_v36 = vpop.f32.mrf.mxu1  ;;  %v1463_v60 = vadd.f32 %v1462_v5, %v1315_v49  ;;  %v1611_v55 = vadd.f32 %v3617_v35, %v1470_v7 }
 0x25d   :  { %v1603_v5 = vadd.f32 %v1602_v32, %v1463_v60 }
 0x25e   :  { %v3576_v52 = vpop.f32.mrf.mxu0 }
 0x25f   :  { %v1484_v19 = vadd.f32 %v3576_v52, %v1333_v61 }
 0x260   :  { %v1476_v14 = vpop.f32.mrf.mxu0 }
 0x261   :  { %v1477_v6 = vadd.f32 %v1476_v14, %v1327_v25  ;;  %v1627_v14 = vadd.f32 %v3620_v57, %v1484_v19 }
 0x263   :  { %v3579_v37 = vpop.f32.mrf.mxu0  ;;  %v1619_v25 = vadd.f32 %v1618_v34, %v1477_v6 }
 0x264   :  { %v1498_v27 = vadd.f32 %v3579_v37, %v1345_v41 }
 0x265   :  { %v1490_v47 = vpop.f32.mrf.mxu0 }
 0x266   :  { %v1643_v37 = vadd.f32 %v3623_v38, %v1498_v27 }
 0x271   :  { %v3702_v30 = vpop.f32.mrf.mxu1 }
 0x273   :  { %v1890_v9 = vpop.f32.mrf.mxu1 }
 0x275   :  { %v3705_v31 = vpop.f32.mrf.mxu1 }
 0x277   :  { %v1902_v13 = vpop.f32.mrf.mxu1 }
 0x278   :  { %v3658_v45 = vpop.f32.mrf.mxu0 }
 0x279   :  { %v1768_v62 = vadd.f32 %v3658_v45, %v1595_v28  ;;  %v3708_v39 = vpop.f32.mrf.mxu1  ;;  %v1339_v45 = vadd.f32 %v1338_v46, %v1141_v54 }
 0x27a   :  { %v1761_v0 = vpop.f32.mrf.mxu0 }
 0x27b   :  { %v5204_v24 = vadd.f32 %v3702_v30, %v1768_v62  ;;  %v1762_v10 = vadd.f32 %v1761_v0, %v1587_v40  ;;  %v1491_v7 = vadd.f32 %v1490_v47, %v1339_v45  ;;  %v1914_v61 = vpop.f32.mrf.mxu1 }
 0x27c   :  { %v3661_v17 = vpop.f32.mrf.mxu0 }
 0x27d   :  { %v1937_v20 = vsub.f32 0.0, %v5204_v24  ;;  %v5207_v48 = vadd.f32 %v1890_v9, %v1762_v10  ;;  %v1780_v53 = vadd.f32 %v3661_v17, %v1611_v55  ;;  %v3711_v18 = vpop.f32.mrf.mxu1  ;;  %v1635_v26 = vadd.f32 %v1634_v36, %v1491_v7 }
 0x27e   :  { %v1773_v28 = vpop.f32.mrf.mxu0 }
 0x27f   :  { %v1946_v49 = vmul.f32 1.442695, %v1937_v20  ;;  %v1936_v30 = vsub.f32 0.0, %v5207_v48  ;;  %v5210_v62 = vadd.f32 %v3705_v31, %v1780_v53  ;;  %v1774_v40 = vadd.f32 %v1773_v28, %v1603_v5  ;;  %v1926_v46 = vpop.f32.mrf.mxu1 }
 0x280   :  { %v3664_v52 = vpop.f32.mrf.mxu0 }
 0x281   :  { %4079 = vpow2.f32 %v1946_v49  ;;  %v1944_v35 = vmul.f32 1.442695, %v1936_v30  ;;  %v1939_v9 = vsub.f32 0.0, %v5210_v62  ;;  %v5213_v51 = vadd.f32 %v1902_v13, %v1774_v40 }
 0x282   :  { %v1792_v60 = vadd.f32 %v3664_v52, %v1627_v14  ;;  %v1785_v32 = vpop.f32.mrf.mxu0 }
 0x283   :  { %4081 = vpow2.f32 %v1944_v35  ;;  %v1950_v12 = vmul.f32 1.442695, %v1939_v9  ;;  %v1938_v31 = vsub.f32 0.0, %v5213_v51  ;;  %v1786_v50 = vadd.f32 %v1785_v32, %v1619_v25 }
 0x284   :  { %v5216_v47 = vadd.f32 %v3708_v39, %v1792_v60  ;;  %v3667_v57 = vpop.f32.mrf.mxu0 }
 0x285   :  { %4083 = vpow2.f32 %v1950_v12  ;;  %v1948_v34 = vmul.f32 1.442695, %v1938_v31  ;;  %v5218_v1 = vadd.f32 %v1914_v61, %v1786_v50  ;;  %v1804_v63 = vadd.f32 %v3667_v57, %v1643_v37 }
 0x286   :  { %v1941_v13 = vsub.f32 0.0, %v5216_v47  ;;  %v1797_v22 = vpop.f32.mrf.mxu0 }
 0x287   :  { %4085 = vpow2.f32 %v1948_v34  ;;  %v1940_v38 = vsub.f32 0.0, %v5218_v1  ;;  %v5222_v58 = vadd.f32 %v3711_v18, %v1804_v63  ;;  %v1798_v4 = vadd.f32 %v1797_v22, %v1635_v26 }
 0x288   :  { %v1954_v23 = vmul.f32 1.442695, %v1941_v13 }
 0x289   :  { %v1952_v54 = vmul.f32 1.442695, %v1940_v38  ;;  %v1943_v0 = vsub.f32 0.0, %v5222_v58  ;;  %v5225_v36 = vadd.f32 %v1926_v46, %v1798_v4 }
 0x28a   :  { %4087 = vpow2.f32 %v1954_v23 }
 0x28b   :  { %4089 = vpow2.f32 %v1952_v54  ;;  %v1958_v10 = vmul.f32 1.442695, %v1943_v0  ;;  %v1942_v55 = vsub.f32 0.0, %v5225_v36 }
 0x28d   :  { %4091 = vpow2.f32 %v1958_v10  ;;  %v1956_v41 = vmul.f32 1.442695, %v1942_v55 }
 0x28e   :  { %v4080_v19 = vpop.eup %4079 }
 0x28f   :  { %v1961_v6 = vadd.f32 1.0, %v4080_v19  ;;  %4093 = vpow2.f32 %v1956_v41 }
 0x290   :  { %v4082_v39 = vpop.eup %4081 }
 0x291   :  { %4095 = vrcp.f32 %v1961_v6  ;;  %v1960_v17 = vadd.f32 1.0, %v4082_v39 }
 0x292   :  { %v4084_v20 = vpop.eup %4083 }
 0x293   :  { %4097 = vrcp.f32 %v1960_v17  ;;  %v1963_v53 = vadd.f32 1.0, %v4084_v20 }
 0x294   :  { %v4086_v5 = vpop.eup %4085 }
 0x295   :  { %4099 = vrcp.f32 %v1963_v53  ;;  %v1962_v45 = vadd.f32 1.0, %v4086_v5 }
 0x297   :  { %v4088_v27 = vpop.eup %4087  ;;  %4101 = vrcp.f32 %v1962_v45 }
 0x298   :  { %v4090_v28 = vpop.eup %4089  ;;  %v1965_v49 = vadd.f32 1.0, %v4088_v27 }
 0x299   :  { %v1964_v30 = vadd.f32 1.0, %v4090_v28 }
 0x29a   :  { %v4092_v40 = vpop.eup %4091  ;;  %4103 = vrcp.f32 %v1965_v49 }
 0x29b   :  { %4105 = vrcp.f32 %v1964_v30  ;;  %v1967_v7 = vadd.f32 1.0, %v4092_v40 }
 0x29c   :  { %v4094_v61 = vpop.eup %4093 }
 0x29d   :  { %4107 = vrcp.f32 %v1967_v7  ;;  %v1966_v14 = vadd.f32 1.0, %v4094_v61 }
 0x29e   :  { %v4096_v52 = vpop.eup %4095 }
 0x29f   :  { %v1971_v25 = vmul.f32 %v4096_v52, %v5204_v24  ;;  %4109 = vrcp.f32 %v1966_v14 }
 0x2a0   :  { %v4098_v35 = vpop.eup %4097 }
 0x2a1   :  { %v5229_v9 = vand.u32 4294901760, %v1971_v25  ;;  %v1969_v60 = vmul.f32 %v4098_v35, %v5207_v48  ;;  %v5747_v35 = vld [vmem:[#allocation33_spill] sm:$0xff] }
 0x2a2   :  { %v4100_v32 = vpop.eup %4099 }
 0x2a3   :  { %v5233_v37 = vsub.f32 %v1971_v25, %v5229_v9  ;;  %v5235_v12 = vand.u32 4294901760, %v1969_v60  ;;  %v1975_v31 = vmul.f32 %v4100_v32, %v5210_v62  ;;  %v5749_v32 = vld [vmem:[#allocation34_spill] sm:$0xff] }
 0x2a4   :  { %v4102_v50 = vpop.eup %4101 }
 0x2a5   :  { %v2093_v18 = vand.u32 4294901760, %v5233_v37  ;;  %v5240_v57 = vsub.f32 %v1969_v60, %v5235_v12  ;;  %v5242_v24 = vand.u32 4294901760, %v1975_v31  ;;  %v1973_v26 = vmul.f32 %v4102_v50, %v5213_v51  ;;  %3788 = vmatprep.mubr.f32.mxu1 %v5235_v12  ;;  %v5752_v50 = vld [vmem:[#allocation44_spill] sm:$0xff] }
 0x2a6   :  { %3789 = vmatmul.mubr.f32.vlgmr.msra.gmra.mxu1 %v5229_v9 }
 0x2a7   :  { %v4104_v48 = vpop.eup %4103  ;;  %v5248_v34 = vsub.f32 %v1975_v31, %v5242_v24  ;;  %v5250_v63 = vand.u32 4294901760, %v1973_v26  ;;  %3845 = vmatpush3.msra.mxu1 %v5010_v29  ;;  %v2083_v62 = vand.u32 4294901760, %v5240_v57  ;;  %v2094_v22 = vsub.f32 %v5233_v37, %v2093_v18  ;;  %v5750_v31 = vld [vmem:[#allocation36_spill] sm:$0xff] }
 0x2a8   :  { %v4106_v13 = vpop.eup %4105  ;;  %v1979_v51 = vmul.f32 %v4104_v48, %v5216_v47  ;;  %3846 = vmatprep.subr.mxu1 %v5015_v44  ;;  %v5754_v48 = vld [vmem:[#allocation16_spill] sm:$0xff] }
 0x2a9   :  { %v5260_v38 = vsub.f32 %v1973_v26, %v5250_v63  ;;  %v1977_v4 = vmul.f32 %v4106_v13, %v5218_v1  ;;  %3847 = vmatpush3.msra.mxu1 %v5015_v44  ;;  %3791 = vmatprep.mubr.f32.mxu1 %v5250_v63  ;;  %v2084_v46 = vsub.f32 %v5240_v57, %v2083_v62  ;;  %v2113_v47 = vand.u32 4294901760, %v5248_v34  ;;  %v5753_v26 = vld [vmem:[#allocation40_spill] sm:$0xff]  ;;  %v5756_v13 = vld [vmem:[#allocation21_spill] sm:$0xff] }
 0x2aa   :  { %v4108_v23 = vpop.eup %4107  ;;  %v5268_v54 = vand.u32 4294901760, %v1979_v51  ;;  %3848 = vmatprep.subr.mxu1 %v5025_v11  ;;  %3792 = vmatmul.mubr.f32.gmra.mxu1 %v5242_v24  ;;  %v2095_v6 = vand.u32 4294901760, %v2094_v22  ;;  %v5758_v22 = vld [vmem:[#allocation31_spill] sm:$0xff] }
 0x2ab   :  { %v5273_v0 = vand.u32 4294901760, %v1977_v4  ;;  %v1983_v1 = vmul.f32 %v4108_v23, %v5222_v58  ;;  %3849 = vmatpush3.msra.mxu1 %v5025_v11  ;;  %v2085_v10 = vand.u32 4294901760, %v2084_v46  ;;  %v2103_v55 = vand.u32 4294901760, %v5260_v38  ;;  %v5761_v46 = vld [vmem:[#allocation19_spill] sm:$0xff]  ;;  %v5762_v23 = vld [vmem:[#allocation26_spill] sm:$0xff] }
 0x2ac   :  { %v4110_v41 = vpop.eup %4109  ;;  %v5279_v19 = vsub.f32 %v1979_v51, %v5268_v54  ;;  %3850 = vmatprep.subr.mxu1 %v5037_v3  ;;  %v5759_v51 = vld [vmem:[#allocation15_spill] sm:$0xff] }
 0x2ad   :  { %v5283_v39 = vsub.f32 %v1977_v4, %v5273_v0  ;;  %v1981_v17 = vmul.f32 %v4110_v41, %v5225_v36  ;;  %3851 = vmatpush3.msra.mxu1 %v5037_v3  ;;  %3744 = vmatprep.mubr.f32.mxu0 %v2085_v10  ;;  %v2104_v58 = vsub.f32 %v5260_v38, %v2103_v55  ;;  %v5290_v20 = vand.u32 4294901760, %v1983_v1  ;;  %v5760_v4 = vld [vmem:[#allocation35_spill] sm:$0xff]  ;;  %v5779_v10 = vld [vmem:[#allocation45_spill] sm:$0xff] }
 0x2ae   :  { %3794 = vmatprep.mubr.f32.mxu1 %v5273_v0  ;;  %3852 = vmatprep.subr.mxu1 %v5050_v8  ;;  %v2114_v36 = vsub.f32 %v5248_v34, %v2113_v47  ;;  %v2133_v49 = vand.u32 4294901760, %v5279_v19 }
 0x2af   :  { %v5294_v53 = vand.u32 4294901760, %v1981_v17  ;;  %3745 = vmatmul.mubr.f32.vlgmr.msra.gmra.mxu0 %v2095_v6  ;;  %3795 = vmatmul.mubr.f32.gmra.mxu1 %v5268_v54  ;;  %v2105_v5 = vand.u32 4294901760, %v2104_v58  ;;  %v2123_v45 = vand.u32 4294901760, %v5283_v39  ;;  %v5313_v30 = vsub.f32 %v1983_v1, %v5290_v20  ;;  %v5763_v1 = vld [vmem:[#allocation38_spill] sm:$0xff] }
 0x2b0   :  { %3801 = vmatpush3.msra.mxu0 %v5013_v2  ;;  %3853 = vmatpush3.msra.mxu1 %v5050_v8  ;;  %v2115_v2 = vand.u32 4294901760, %v2114_v36 }
 0x2b1   :  { %v5304_v27 = vsub.f32 %v1981_v17, %v5294_v53  ;;  %3802 = vmatprep.subr.mxu0 %v5023_v43  ;;  %3854 = vmatprep.subr.mxu1 %v5058_v15  ;;  %v2124_v28 = vsub.f32 %v5283_v39, %v2123_v45  ;;  %v2153_v14 = vand.u32 4294901760, %v5313_v30 }
 0x2b2   :  { %3803 = vmatpush3.msra.mxu0 %v5023_v43  ;;  %3855 = vmatpush3.msra.mxu1 %v5058_v15  ;;  %v2134_v43 = vsub.f32 %v5279_v19, %v2133_v49 }
 0x2b3   :  { %3747 = vmatprep.mubr.f32.mxu0 %v2105_v5  ;;  %3797 = vmatprep.mubr.f32.mxu1 %v5294_v53  ;;  %v2143_v40 = vand.u32 4294901760, %v5304_v27  ;;  %v2125_v7 = vand.u32 4294901760, %v2124_v28  ;;  %v2154_v25 = vsub.f32 %v5313_v30, %v2153_v14 }
 0x2b4   :  { %3804 = vmatprep.subr.mxu0 %v5035_v21  ;;  %3856 = vmatprep.subr.mxu1 %v5069_v33 }
 0x2b5   :  { %3748 = vmatmul.mubr.f32.gmra.mxu0 %v2115_v2  ;;  %3798 = vmatmul.mubr.f32.gmra.mxu1 %v5290_v20  ;;  %v2144_v61 = vsub.f32 %v5304_v27, %v2143_v40  ;;  %v2155_v60 = vand.u32 4294901760, %v2154_v25 }
 0x2b6   :  { %3805 = vmatpush3.msra.mxu0 %v5035_v21  ;;  %3857 = vmatpush3.msra.mxu1 %v5069_v33  ;;  %v2135_v21 = vand.u32 4294901760, %v2134_v43 }
 0x2b7   :  { %3806 = vmatprep.subr.mxu0 %v5047_v42  ;;  %3858 = vmatprep.subr.mxu1 %v5082_v59  ;;  %v2145_v52 = vand.u32 4294901760, %v2144_v61 }
 0x2b8   :  { %3876 = vmatprep.mubr.f32.mxu1 %v2083_v62  ;;  %3807 = vmatpush3.msra.mxu0 %v5047_v42  ;;  %v5748_v42 = vld [vmem:[#allocation22_spill] sm:$0xff]  ;;  %v5755_v62 = vld [vmem:[#allocation39_spill] sm:$0xff] }
 0x2b9   :  { %3859 = vmatpush3.msra.mxu1 %v5082_v59  ;;  %3750 = vmatprep.mubr.f32.mxu0 %v2125_v7 }
 0x2ba   :  { %3808 = vmatprep.subr.mxu0 %v5061_v56  ;;  %3860 = vmatprep.subr.mxu1 %v5096_v16 }
 0x2bb   :  { %3751 = vmatmul.mubr.f32.gmra.mxu0 %v2135_v21  ;;  %3861 = vmatpush3.msra.mxu1 %v5096_v16 }
 0x2bc   :  { %3809 = vmatpush3.msra.mxu0 %v5061_v56  ;;  %3862 = vmatprep.subr.mxu1 %v5747_v35  ;;  %v5751_v56 = vld [vmem:[#allocation37_spill] sm:$0xff] }
 0x2bd   :  { %3810 = vmatprep.subr.mxu0 %v5748_v42  ;;  %3863 = vmatpush3.msra.mxu1 %v5747_v35 }
 0x2be   :  { %3811 = vmatpush3.msra.mxu0 %v5748_v42  ;;  %3753 = vmatprep.mubr.f32.mxu0 %v2145_v52 }
 0x2bf   :  { %3812 = vmatprep.subr.mxu0 %v5749_v32  ;;  %3864 = vmatprep.subr.mxu1 %v5750_v31 }
 0x2c0   :  { %3754 = vmatmul.mubr.f32.gmra.mxu0 %v2155_v60  ;;  %3865 = vmatpush3.msra.mxu1 %v5750_v31 }
 0x2c1   :  { %3813 = vmatpush3.msra.mxu0 %v5749_v32  ;;  %3832 = vmatprep.mubr.f32.mxu0 %v5240_v57  ;;  %v5757_v57 = vld [vmem:[#allocation43_spill] sm:$0xff] }
 0x2c2   :  { %3814 = vmatprep.subr.mxu0 %v5751_v56  ;;  %3866 = vmatprep.subr.mxu1 %v5752_v50 }
 0x2c3   :  { %3815 = vmatpush3.msra.mxu0 %v5751_v56  ;;  %3867 = vmatpush3.msra.mxu1 %v5752_v50 }
 0x2c4   :  { %3816 = vmatprep.subr.mxu0 %v5753_v26  ;;  %3868 = vmatprep.subr.mxu1 %v5754_v48 }
 0x2c5   :  { %3817 = vmatpush3.msra.mxu0 %v5753_v26  ;;  %3869 = vmatpush3.msra.mxu1 %v5754_v48 }
 0x2c6   :  { %3818 = vmatprep.subr.mxu0 %v5755_v62  ;;  %3870 = vmatprep.subr.mxu1 %v5756_v13 }
 0x2c7   :  { %3819 = vmatpush3.msra.mxu0 %v5755_v62  ;;  %3871 = vmatpush3.msra.mxu1 %v5756_v13 }
 0x2c8   :  { %3820 = vmatprep.subr.mxu0 %v5757_v57  ;;  %3872 = vmatprep.subr.mxu1 %v5758_v22 }
 0x2c9   :  { %3821 = vmatpush3.msra.mxu0 %v5757_v57  ;;  %3873 = vmatpush3.msra.mxu1 %v5758_v22 }
 0x2ca   :  { %3822 = vmatprep.subr.mxu0 %v5759_v51  ;;  %3874 = vmatprep.subr.mxu1 %v5760_v4 }
 0x2cb   :  { %3823 = vmatpush3.msra.mxu0 %v5759_v51  ;;  %3875 = vmatpush3.msra.mxu1 %v5760_v4 }
 0x2cc   :  { %3824 = vmatprep.subr.mxu0 %v5761_v46  ;;  %3877 = vmatmul.mubr.f32.vlgmr.msra.gmra.mxu1 %v2093_v18  ;;  %v5774_v18 = vld [vmem:[#allocation13_spill] sm:$0xff] }
 0x2cd   :  { %3932 = vmatprep.subr.mxu1 %v5010_v29  ;;  %3825 = vmatpush3.msra.mxu0 %v5761_v46 }
 0x2ce   :  { %3879 = vmatprep.mubr.f32.mxu1 %v2103_v55  ;;  %3933 = vmatpush3.msra.mxu1 %v5010_v29  ;;  %v5764_v29 = vld [vmem:[#allocation41_spill] sm:$0xff]  ;;  %v5780_v55 = vld [vmem:[#allocation46_spill] sm:$0xff] }
 0x2cf   :  { %3826 = vmatprep.subr.mxu0 %v5762_v23  ;;  %3934 = vmatprep.subr.mxu1 %v5015_v44 }
 0x2d0   :  { %3827 = vmatpush3.msra.mxu0 %v5762_v23  ;;  %3935 = vmatpush3.msra.mxu1 %v5015_v44  ;;  %v5765_v44 = vld [vmem:[#allocation17_spill] sm:$0xff] }
 0x2d1   :  { %3828 = vmatprep.subr.mxu0 %v5763_v1  ;;  %3880 = vmatmul.mubr.f32.gmra.mxu1 %v2113_v47  ;;  %v5778_v47 = vld [vmem:[#allocation32_spill] sm:$0xff] }
 0x2d2   :  { %3936 = vmatprep.subr.mxu1 %v5025_v11  ;;  %3829 = vmatpush3.msra.mxu0 %v5763_v1 }
 0x2d3   :  { %3882 = vmatprep.mubr.f32.mxu1 %v2123_v45  ;;  %3937 = vmatpush3.msra.mxu1 %v5025_v11  ;;  %v5766_v11 = vld [vmem:[#allocation25_spill] sm:$0xff] }
 0x2d4   :  { %3830 = vmatprep.subr.mxu0 %v5764_v29  ;;  %3938 = vmatprep.subr.mxu1 %v5037_v3 }
 0x2d5   :  { %3831 = vmatpush3.msra.mxu0 %v5764_v29  ;;  %3939 = vmatpush3.msra.mxu1 %v5037_v3  ;;  %v5767_v3 = vld [vmem:[#allocation20_spill] sm:$0xff] }
 0x2d6   :  { %3833 = vmatmul.mubr.f32.vlgmr.msra.gmra.mxu0 %v5233_v37  ;;  %3883 = vmatmul.mubr.f32.gmra.mxu1 %v2133_v49  ;;  %v5773_v37 = vld [vmem:[#allocation42_spill] sm:$0xff] }
 0x2d7   :  { %3888 = vmatprep.subr.mxu0 %v5765_v44  ;;  %3940 = vmatprep.subr.mxu1 %v5050_v8 }
 0x2d8   :  { %3835 = vmatprep.mubr.f32.mxu0 %v5260_v38  ;;  %3885 = vmatprep.mubr.f32.mxu1 %v2143_v40  ;;  %v5777_v38 = vld [vmem:[#allocation23_spill] sm:$0xff] }
 0x2d9   :  { %3889 = vmatpush3.msra.mxu0 %v5765_v44  ;;  %3941 = vmatpush3.msra.mxu1 %v5050_v8  ;;  %v5768_v8 = vld [vmem:[#allocation27_spill] sm:$0xff] }
 0x2da   :  { %3890 = vmatprep.subr.mxu0 %v5766_v11  ;;  %3942 = vmatprep.subr.mxu1 %v5058_v15 }
 0x2db   :  { %3891 = vmatpush3.msra.mxu0 %v5766_v11  ;;  %3943 = vmatpush3.msra.mxu1 %v5058_v15  ;;  %v5769_v15 = vld [vmem:[#allocation30_spill] sm:$0xff] }
 0x2dc   :  { %3836 = vmatmul.mubr.f32.gmra.mxu0 %v5248_v34  ;;  %3886 = vmatmul.mubr.f32.gmra.mxu1 %v2153_v14  ;;  %v5776_v34 = vld [vmem:[#allocation18_spill] sm:$0xff] }
 0x2dd   :  { %3892 = vmatprep.subr.mxu0 %v5767_v3  ;;  %3944 = vmatprep.subr.mxu1 %v5069_v33 }
 0x2de   :  { %3838 = vmatprep.mubr.f32.mxu0 %v5283_v39  ;;  %3893 = vmatpush3.msra.mxu0 %v5767_v3 }
 0x2df   :  { %3945 = vmatpush3.msra.mxu1 %v5069_v33  ;;  %3964 = vmatprep.mubr.f32.mxu1 %v5235_v12  ;;  %v5770_v33 = vld [vmem:[#allocation24_spill] sm:$0xff] }
 0x2e0   :  { %3894 = vmatprep.subr.mxu0 %v5768_v8  ;;  %3946 = vmatprep.subr.mxu1 %v5082_v59 }
 0x2e1   :  { %3895 = vmatpush3.msra.mxu0 %v5768_v8  ;;  %3947 = vmatpush3.msra.mxu1 %v5082_v59  ;;  %v5771_v59 = vld [vmem:[#allocation28_spill] sm:$0xff] }
 0x2e2   :  { %3839 = vmatmul.mubr.f32.gmra.mxu0 %v5279_v19  ;;  %3896 = vmatprep.subr.mxu0 %v5769_v15 }
 0x2e3   :  { %3948 = vmatprep.subr.mxu1 %v5096_v16  ;;  %3841 = vmatprep.mubr.f32.mxu0 %v5304_v27 }
 0x2e4   :  { %3897 = vmatpush3.msra.mxu0 %v5769_v15  ;;  %3949 = vmatpush3.msra.mxu1 %v5096_v16  ;;  %v5772_v16 = vld [vmem:[#allocation29_spill] sm:$0xff] }
 0x2e5   :  { %3898 = vmatprep.subr.mxu0 %v5770_v33  ;;  %3950 = vmatprep.subr.mxu1 %v5747_v35 }
 0x2e6   :  { %3899 = vmatpush3.msra.mxu0 %v5770_v33  ;;  %3951 = vmatpush3.msra.mxu1 %v5747_v35 }
 0x2e7   :  { %3842 = vmatmul.mubr.f32.gmra.mxu0 %v5313_v30  ;;  %3900 = vmatprep.subr.mxu0 %v5771_v59 }
 0x2e8   :  { %3952 = vmatprep.subr.mxu1 %v5750_v31  ;;  %3901 = vmatpush3.msra.mxu0 %v5771_v59 }
 0x2e9   :  { %3920 = vmatprep.mubr.f32.mxu0 %v5235_v12  ;;  %3953 = vmatpush3.msra.mxu1 %v5750_v31  ;;  %v5775_v12 = vld [vmem:[#allocation14_spill] sm:$0xff] }
 0x2ea   :  { %3902 = vmatprep.subr.mxu0 %v5772_v16  ;;  %3954 = vmatprep.subr.mxu1 %v5752_v50 }
 0x2eb   :  { %3903 = vmatpush3.msra.mxu0 %v5772_v16  ;;  %3955 = vmatpush3.msra.mxu1 %v5752_v50 }
 0x2ec   :  { %3904 = vmatprep.subr.mxu0 %v5773_v37  ;;  %3956 = vmatprep.subr.mxu1 %v5754_v48 }
 0x2ed   :  { %3905 = vmatpush3.msra.mxu0 %v5773_v37  ;;  %3957 = vmatpush3.msra.mxu1 %v5754_v48 }
 0x2ee   :  { %3906 = vmatprep.subr.mxu0 %v5774_v18  ;;  %3958 = vmatprep.subr.mxu1 %v5756_v13 }
 0x2ef   :  { %3907 = vmatpush3.msra.mxu0 %v5774_v18  ;;  %3959 = vmatpush3.msra.mxu1 %v5756_v13 }
 0x2f0   :  { %3908 = vmatprep.subr.mxu0 %v5775_v12  ;;  %3960 = vmatprep.subr.mxu1 %v5758_v22 }
 0x2f1   :  { %3909 = vmatpush3.msra.mxu0 %v5775_v12  ;;  %3961 = vmatpush3.msra.mxu1 %v5758_v22 }
 0x2f2   :  { %3910 = vmatprep.subr.mxu0 %v5776_v34  ;;  %3962 = vmatprep.subr.mxu1 %v5760_v4 }
 0x2f3   :  { %3911 = vmatpush3.msra.mxu0 %v5776_v34  ;;  %3963 = vmatpush3.msra.mxu1 %v5760_v4 }
 0x2f4   :  { %3912 = vmatprep.subr.mxu0 %v5777_v38  ;;  %3965 = vmatmul.mubr.f32.vlgmr.msra.gmra.mxu1 %v5229_v9 }
 0x2f5   :  { %3913 = vmatpush3.msra.mxu0 %v5777_v38  ;;  %3967 = vmatprep.mubr.f32.mxu1 %v5250_v63 }
 0x2f6   :  { %3914 = vmatprep.subr.mxu0 %v5778_v47 }
 0x2f7   :  { %3915 = vmatpush3.msra.mxu0 %v5778_v47 }
 0x2f8   :  { %3916 = vmatprep.subr.mxu0 %v5779_v10  ;;  %3968 = vmatmul.mubr.f32.gmra.mxu1 %v5242_v24 }
 0x2f9   :  { %3917 = vmatpush3.msra.mxu0 %v5779_v10  ;;  %3970 = vmatprep.mubr.f32.mxu1 %v5273_v0 }
 0x2fa   :  { %3918 = vmatprep.subr.mxu0 %v5780_v55 }
 0x2fb   :  { %3919 = vmatpush3.msra.mxu0 %v5780_v55 }
 0x2fc   :  { %3921 = vmatmul.mubr.f32.vlgmr.msra.gmra.mxu0 %v5229_v9  ;;  %3971 = vmatmul.mubr.f32.gmra.mxu1 %v5268_v54 }
 0x2fd   :  { %3923 = vmatprep.mubr.f32.mxu0 %v5250_v63  ;;  %3973 = vmatprep.mubr.f32.mxu1 %v5294_v53 }
 0x300   :  { %3924 = vmatmul.mubr.f32.gmra.mxu0 %v5242_v24  ;;  %3974 = vmatmul.mubr.f32.gmra.mxu1 %v5290_v20 }
 0x301   :  { %3926 = vmatprep.mubr.f32.mxu0 %v5273_v0 }
 0x304   :  { %3927 = vmatmul.mubr.f32.gmra.mxu0 %v5268_v54 }
 0x305   :  { %3929 = vmatprep.mubr.f32.mxu0 %v5294_v53 }
 0x308   :  { %3930 = vmatmul.mubr.f32.gmra.mxu0 %v5290_v20 }
 0x366   :  { %v3790_v41 = vpop.f32.mrf.mxu1 }
 0x368   :  { %v2308_v9 = vpop.f32.mrf.mxu1 }
 0x36a   :  { %v3793_v19 = vpop.f32.mrf.mxu1 }
 0x36c   :  { %v2320_v39 = vpop.f32.mrf.mxu1 }
 0x36f   :  { %v3746_v6 = vpop.f32.mrf.mxu0  ;;  %v3796_v17 = vpop.f32.mrf.mxu1 }
 0x370   :  { %v2315_v60 = vadd.f32 %v3790_v41, %v3746_v6 }
 0x371   :  { %v2087_v63 = vpop.f32.mrf.mxu0  ;;  %v2332_v5 = vpop.f32.mrf.mxu1 }
 0x372   :  { %v2309_v56 = vadd.f32 %v2308_v9, %v2087_v63 }
 0x375   :  { %v3749_v58 = vpop.f32.mrf.mxu0  ;;  %v3799_v36 = vpop.f32.mrf.mxu1 }
 0x376   :  { %v2327_v48 = vadd.f32 %v3793_v19, %v3749_v58 }
 0x377   :  { %v2107_v24 = vpop.f32.mrf.mxu0  ;;  %v2344_v27 = vpop.f32.mrf.mxu1 }
 0x378   :  { %v2321_v57 = vadd.f32 %v2320_v39, %v2107_v24 }
 0x37b   :  { %v3752_v45 = vpop.f32.mrf.mxu0 }
 0x37c   :  { %v2339_v23 = vadd.f32 %v3796_v17, %v3752_v45 }
 0x37d   :  { %v2127_v0 = vpop.f32.mrf.mxu0 }
 0x37e   :  { %v2333_v11 = vadd.f32 %v2332_v5, %v2127_v0 }
 0x380   :  { %v3755_v54 = vpop.f32.mrf.mxu0 }
 0x381   :  { %v2351_v16 = vadd.f32 %v3799_v36, %v3755_v54 }
 0x382   :  { %v2147_v53 = vpop.f32.mrf.mxu0 }
 0x383   :  { %v2345_v10 = vadd.f32 %v2344_v27, %v2147_v53 }
 0x38c   :  { %v3878_v28 = vpop.f32.mrf.mxu1 }
 0x38e   :  { %v2592_v49 = vpop.f32.mrf.mxu1 }
 0x391   :  { %v3881_v30 = vpop.f32.mrf.mxu1 }
 0x393   :  { %v2608_v2 = vpop.f32.mrf.mxu1 }
 0x396   :  { %v3834_v20 = vpop.f32.mrf.mxu0  ;;  %v3884_v7 = vpop.f32.mrf.mxu1 }
 0x397   :  { %v2462_v50 = vadd.f32 %v3834_v20, %v2315_v60 }
 0x398   :  { %v2454_v40 = vpop.f32.mrf.mxu0  ;;  %v2624_v61 = vpop.f32.mrf.mxu1 }
 0x399   :  { %v2455_v62 = vadd.f32 %v2454_v40, %v2309_v56  ;;  %v2601_v51 = vadd.f32 %v3878_v28, %v2462_v50 }
 0x39b   :  { %v2593_v44 = vadd.f32 %v2592_v49, %v2455_v62 }
 0x39c   :  { %v3837_v43 = vpop.f32.mrf.mxu0  ;;  %v3887_v21 = vpop.f32.mrf.mxu1 }
 0x39d   :  { %v2476_v22 = vadd.f32 %v3837_v43, %v2327_v48 }
 0x39e   :  { %v2468_v14 = vpop.f32.mrf.mxu0  ;;  %v2640_v25 = vpop.f32.mrf.mxu1 }
 0x39f   :  { %v2469_v1 = vadd.f32 %v2468_v14, %v2321_v57  ;;  %v2617_v59 = vadd.f32 %v3881_v30, %v2476_v22 }
 0x3a1   :  { %v2609_v47 = vadd.f32 %v2608_v2, %v2469_v1 }
 0x3a2   :  { %v3840_v52 = vpop.f32.mrf.mxu0 }
 0x3a3   :  { %v2490_v8 = vadd.f32 %v3840_v52, %v2339_v23 }
 0x3a4   :  { %v2482_v35 = vpop.f32.mrf.mxu0 }
 0x3a5   :  { %v2483_v12 = vadd.f32 %v2482_v35, %v2333_v11  ;;  %v2633_v6 = vadd.f32 %v3884_v7, %v2490_v8 }
 0x3a7   :  { %v3843_v32 = vpop.f32.mrf.mxu0  ;;  %v2625_v24 = vadd.f32 %v2624_v61, %v2483_v12 }
 0x3a8   :  { %v2504_v41 = vadd.f32 %v3843_v32, %v2351_v16 }
 0x3a9   :  { %v2496_v13 = vpop.f32.mrf.mxu0 }
 0x3aa   :  { %v2497_v17 = vadd.f32 %v2496_v13, %v2345_v10  ;;  %v2649_v28 = vadd.f32 %v3887_v21, %v2504_v41 }
 0x3ac   :  { %v2641_v30 = vadd.f32 %v2640_v25, %v2497_v17 }
 0x3b4   :  { %v3966_v42 = vpop.f32.mrf.mxu1 }
 0x3b6   :  { %v2896_v31 = vpop.f32.mrf.mxu1 }
 0x3b8   :  { %v3969_v26 = vpop.f32.mrf.mxu1 }
 0x3ba   :  { %v2908_v4 = vpop.f32.mrf.mxu1 }
 0x3bc   :  { %v3922_v46 = vpop.f32.mrf.mxu0  ;;  %v3972_v37 = vpop.f32.mrf.mxu1 }
 0x3bd   :  { %v2774_v29 = vadd.f32 %v3922_v46, %v2601_v51 }
 0x3be   :  { %v2767_v3 = vpop.f32.mrf.mxu0  ;;  %v2920_v39 = vpop.f32.mrf.mxu1 }
 0x3bf   :  { %v2903_v15 = vadd.f32 %v3966_v42, %v2774_v29  ;;  %v2768_v33 = vadd.f32 %v2767_v3, %v2593_v44 }
 0x3c0   :  { %v3925_v18 = vpop.f32.mrf.mxu0  ;;  %v3975_v54 = vpop.f32.mrf.mxu1 }
 0x3c1   :  { %2943 = vst [vmem:[#allocation9 + $0x8] sm:$0xff] %v2903_v15  ;;  %v2897_v34 = vadd.f32 %v2896_v31, %v2768_v33  ;;  %v2786_v38 = vadd.f32 %v3925_v18, %v2617_v59 }
 0x3c2   :  { %v2779_v55 = vpop.f32.mrf.mxu0  ;;  %v2932_v7 = vpop.f32.mrf.mxu1 }
 0x3c3   :  { %2942 = vst [vmem:[#allocation9] sm:$0xff] %v2897_v34  ;;  %v2915_v9 = vadd.f32 %v3969_v26, %v2786_v38  ;;  %v2780_v19 = vadd.f32 %v2779_v55, %v2609_v47 }
 0x3c4   :  { %v3928_v63 = vpop.f32.mrf.mxu0 }
 0x3c5   :  { %2945 = vst [vmem:[#allocation9 + $0x18] sm:$0xff] %v2915_v9  ;;  %v2909_v58 = vadd.f32 %v2908_v4, %v2780_v19  ;;  %v2798_v5 = vadd.f32 %v3928_v63, %v2633_v6 }
 0x3c6   :  { %v2791_v36 = vpop.f32.mrf.mxu0 }
 0x3c7   :  { %2944 = vst [vmem:[#allocation9 + $0x10] sm:$0xff] %v2909_v58  ;;  %v2927_v45 = vadd.f32 %v3972_v37, %v2798_v5  ;;  %v2792_v0 = vadd.f32 %v2791_v36, %v2625_v24 }
 0x3c8   :  { %v3931_v27 = vpop.f32.mrf.mxu0 }
 0x3c9   :  { %2947 = vst [vmem:[#allocation9 + $0x28] sm:$0xff] %v2927_v45  ;;  %v2921_v49 = vadd.f32 %v2920_v39, %v2792_v0  ;;  %v2810_v53 = vadd.f32 %v3931_v27, %v2649_v28 }
 0x3ca   :  { %v2803_v20 = vpop.f32.mrf.mxu0 }
 0x3cb   :  { %2946 = vst [vmem:[#allocation9 + $0x20] sm:$0xff] %v2921_v49  ;;  %v2939_v2 = vadd.f32 %v3975_v54, %v2810_v53  ;;  %v2804_v40 = vadd.f32 %v2803_v20, %v2641_v30 }
 0x3cd   :  { %2949 = vst [vmem:[#allocation9 + $0x38] sm:$0xff] %v2939_v2  ;;  %v2933_v43 = vadd.f32 %v2932_v7, %v2804_v40 }
 0x3cf   :  { %2948 = vst [vmem:[#allocation9 + $0x30] sm:$0xff] %v2933_v43 }
 0x3d0   :  { %4162 = shalt.err (!%p4159_p0)
}
 0x3d1   :  { %2961 = dma.vmem_to_hbm [thread:$0]  %s2956_s9, 1024, %s5494_s6, [#allocation6], %s4178_s24, %s4178_s24, %s4179_s25  }
 0x3d2   :  { %4175 = dma.done.wait [#allocation6], 1024  }
 0x3d3   :  { %4176 = vsyncadd [#allocation6], 4294966272 }
 0x3d4   :  { %2965 = vsyncpa [#allocation5], 1 }
 0x3d5   :  { %2966 = vsyncpa [#allocation8], 1 }
 0x3d6   :  { %2967 = vsyncpa [#allocation6], 1 }

</bundles_post_ra>
